<compile_context>
chip_gen: v7x
topology: tpu7x:2x2x1
jax: 0.10.0
libtpu: 0.0.40
codegen_flags: <defaults>
</compile_context>

<pallas_src>
import functools

import jax
import jax.numpy as jnp
from jax.experimental import pallas as pl
from jax.experimental.pallas import tpu as pltpu

IN_FEATURES = 32 * 32 * 3   # 3072, lane-aligned
HIDDEN = 256
OUT_PAD = 128               # lane-dense padded width of the output head


def _round_up(n, m):
    return -(-n // m) * m


def _skipnet_kernel(
    x_ref,
    w1_ref, b1_ref,
    w2_ref, b2_ref,
    wls1_ref, bls1_ref, a1_ref,
    w3_ref, b3_ref,
    wls2_ref, bls2_ref, a2_ref,
    wout_ref, bout_ref,
    out_ref,
):
    def linear_relu(h32, w_ref, b_ref):
        y = jnp.dot(h32.astype(jnp.bfloat16), w_ref[...],
                    preferred_element_type=jnp.float32)
        return jnp.maximum(y + b_ref[...], 0.0)

    # x tile arrives as raw f32; cast to bf16 right before the MXU dot
    # (VPU op, rides in slack slots under the BW-bound roofline).
    h = linear_relu(x_ref[...], w1_ref, b1_ref)       # fc1 + ReLU
    h = linear_relu(h, w2_ref, b2_ref)                # fc2 + ReLU

    # LearnableSkipLayer 1: t = ReLU(Linear(h)); h = t*a + h*(1-a)  (f32 blend)
    a1 = a1_ref[0]
    t = linear_relu(h, wls1_ref, bls1_ref)
    h = t * a1 + h * (1.0 - a1)

    h = linear_relu(h, w3_ref, b3_ref)                # fc3 + ReLU

    # LearnableSkipLayer 2
    a2 = a2_ref[0]
    t = linear_relu(h, wls2_ref, bls2_ref)
    h = t * a2 + h * (1.0 - a2)

    # Output head (lane-dense, padded to 128 cols; no activation). bf16 store.
    out = jnp.dot(h.astype(jnp.bfloat16), wout_ref[...],
                  preferred_element_type=jnp.float32) + bout_ref[...]
    out_ref[...] = out.astype(out_ref.dtype)


def _choose_tb(batch):
    """Batch tile. Small batches: one minimally padded (16-aligned) block.
    Large batches: 512 (multiple of 256), giving >=2 blocks so v7x's two
    TensorCores split the parallel batch axis."""
    b16 = _round_up(max(batch, 1), 16)
    if b16 <= 512:
        return b16
    return min(512, _round_up(pl.cdiv(b16, 2), 256))


@functools.partial(jax.jit, static_argnames=("tb", "num_classes"))
def _skipnet_forward(x_nchw, prep, *, tb, num_classes):
    B = x_nchw.shape[0]
    (w1, b1, w2, b2, wls1, bls1, a1, w3, b3, wls2, bls2, a2,
     wout_p, bout_p) = prep

    # nn.Flatten on NCHW. Stays f32 (no bf16 pre-pass); reshape is layout-free.
    x2d = x_nchw.reshape(B, IN_FEATURES)

    # Pad batch to a multiple of 16 (bf16 sublane packing for the output tile);
    # identity for typical batch sizes. Ragged tb-granularity blocks are
    # handled by Pallas (garbage rows discarded by the wrapper slice).
    b_pad = _round_up(B, 16)
    if b_pad != B:
        x2d = jnp.pad(x2d, ((0, b_pad - B), (0, 0)))
    n_blocks = pl.cdiv(b_pad, tb)

    resident = pl.Buffered(buffer_count=1)   # weights: DMA once, single buffer

    def w_spec(arr):
        return pl.BlockSpec(arr.shape, lambda i: (0, 0), pipeline_mode=resident)

    smem_spec = pl.BlockSpec((1,), lambda i: (0,),
                             memory_space=pltpu.MemorySpace.SMEM)

    in_specs = [
        pl.BlockSpec((tb, IN_FEATURES), lambda i: (i, 0)),   # x tile (streamed, f32)
        w_spec(w1), w_spec(b1),
        w_spec(w2), w_spec(b2),
        w_spec(wls1), w_spec(bls1), smem_spec,
        w_spec(w3), w_spec(b3),
        w_spec(wls2), w_spec(bls2), smem_spec,
        w_spec(wout_p), w_spec(bout_p),
    ]
    out_spec = pl.BlockSpec((tb, OUT_PAD), lambda i: (i, 0))

    out_padded = pl.pallas_call(
        _skipnet_kernel,
        out_shape=jax.ShapeDtypeStruct((b_pad, OUT_PAD), jnp.bfloat16),
        grid=(n_blocks,),
        in_specs=in_specs,
        out_specs=out_spec,
        compiler_params=pltpu.CompilerParams(
            dimension_semantics=("parallel",),
            vmem_limit_bytes=40 * 1024 * 1024,
        ),
    )(x2d, w1, b1, w2, b2, wls1, bls1, a1, w3, b3, wls2, bls2, a2,
      wout_p, bout_p)

    return out_padded[:B, :num_classes].astype(jnp.float32)


def skipnet_forward(x_nchw, prepared_params, num_classes, tb=None):
    """x_nchw: (B, 3, 32, 32) float32. Returns (B, num_classes) float32."""
    if tb is None:
        tb = _choose_tb(x_nchw.shape[0])
    return _skipnet_forward(x_nchw, prepared_params, tb=tb,
                            num_classes=num_classes)


def init_params(key, num_classes=10):
    """PyTorch-like init (f32). Weights stored (in, out); biases (out,);
    alphas zero as in LearnableSkipLayer.__init__."""
    def linear(key, fan_in, fan_out):
        kw, kb = jax.random.split(key)
        bound = 1.0 / jnp.sqrt(fan_in)
        w = jax.random.uniform(kw, (fan_in, fan_out), jnp.float32, -bound, bound)
        b = jax.random.uniform(kb, (fan_out,), jnp.float32, -bound, bound)
        return w, b

    keys = jax.random.split(key, 6)
    w1, b1 = linear(keys[0], IN_FEATURES, HIDDEN)
    w2, b2 = linear(keys[1], HIDDEN, HIDDEN)
    wls1, bls1 = linear(keys[2], HIDDEN, HIDDEN)
    w3, b3 = linear(keys[3], HIDDEN, HIDDEN)
    wls2, bls2 = linear(keys[4], HIDDEN, HIDDEN)
    wout, bout = linear(keys[5], HIDDEN, num_classes)
    a1 = jnp.zeros((1,), jnp.float32)
    a2 = jnp.zeros((1,), jnp.float32)
    return (w1, b1, w2, b2, wls1, bls1, a1, w3, b3, wls2, bls2, a2, wout, bout)


def prepare_params(params):
    """One-time kernel-side param prep: bf16 matmul weights, f32 (1, out)
    biases, f32 alphas, and the head lane-padded 10 -> 128."""
    (w1, b1, w2, b2, wls1, bls1, a1, w3, b3, wls2, bls2, a2, wout, bout) = params
    num_classes = wout.shape[-1]

    def wq(w):
        return w.astype(jnp.bfloat16)

    def bq(b):
        return b.reshape(1, -1).astype(jnp.float32)

    wout_p = (jnp.zeros((HIDDEN, OUT_PAD), jnp.bfloat16)
              .at[:, :num_classes].set(wout.astype(jnp.bfloat16)))
    bout_p = (jnp.zeros((1, OUT_PAD), jnp.float32)
              .at[:, :num_classes].set(bout.reshape(1, -1).astype(jnp.float32)))

    prep = (wq(w1), bq(b1),
            wq(w2), bq(b2),
            wq(wls1), bq(bls1), a1.reshape(1).astype(jnp.float32),
            wq(w3), bq(b3),
            wq(wls2), bq(bls2), a2.reshape(1).astype(jnp.float32),
            wout_p, bout_p)
    return prep, num_classes


def reference_forward(x_nchw, params):
    """Pure-JAX reference mirroring the PyTorch forward with the same bf16
    matmul inputs / f32 accumulation / bf16 final store as the kernel."""
    (w1, b1, w2, b2, wls1, bls1, a1, w3, b3, wls2, bls2, a2, wout, bout) = params

    def lin(h, w, b):
        return jnp.dot(h.astype(jnp.bfloat16), w.astype(jnp.bfloat16),
                       preferred_element_type=jnp.float32) + b

    x = x_nchw.reshape(x_nchw.shape[0], -1)
    h = jax.nn.relu(lin(x, w1, b1))
    h = jax.nn.relu(lin(h, w2, b2))
    t = jax.nn.relu(lin(h, wls1, bls1))
    h = t * a1[0] + h * (1.0 - a1[0])
    h = jax.nn.relu(lin(h, w3, b3))
    t = jax.nn.relu(lin(h, wls2, bls2))
    h = t * a2[0] + h * (1.0 - a2[0])
    out = lin(h, wout, bout)
    return out.astype(jnp.bfloat16).astype(jnp.float32)


if __name__ == "__main__":
    key = jax.random.PRNGKey(0)
    kx, kp = jax.random.split(key)

    B, num_classes = 2, 10
    x = jax.random.normal(kx, (B, 3, 32, 32), jnp.float32)
    params = init_params(kp, num_classes=num_classes)

    # Use non-zero alphas so the learnable-skip blend path is actually
    # exercised (module init has alpha=0, which would make the skip a no-op).
    a1 = jnp.full((1,), 0.3, jnp.float32)
    a2 = jnp.full((1,), 0.7, jnp.float32)
    params = params[:6] + (a1,) + params[7:11] + (a2,) + params[12:]

    prep, nc = prepare_params(params)

    out = skipnet_forward(x, prep, num_classes=nc)
    out = jax.block_until_ready(out)

    ref = reference_forward(x, params)
    assert out.shape == (B, num_classes)
    assert jnp.allclose(out, ref, atol=2e-2, rtol=2e-2), "mismatch vs reference"

    print("KERNEL_OK")
</pallas_src>

<mosaic_0001>
module attributes {stable_mosaic.version = 11 : i64} {
  func.func @_skipnet_kernel(%arg0: i32, %arg1: memref<16x3072xf32, #tpu.memory_space<vmem>>, %arg2: memref<3072x256xbf16, #tpu.memory_space<vmem>>, %arg3: memref<1x256xf32, #tpu.memory_space<vmem>>, %arg4: memref<256x256xbf16, #tpu.memory_space<vmem>>, %arg5: memref<1x256xf32, #tpu.memory_space<vmem>>, %arg6: memref<256x256xbf16, #tpu.memory_space<vmem>>, %arg7: memref<1x256xf32, #tpu.memory_space<vmem>>, %arg8: memref<1xf32, #tpu.memory_space<smem>>, %arg9: memref<256x256xbf16, #tpu.memory_space<vmem>>, %arg10: memref<1x256xf32, #tpu.memory_space<vmem>>, %arg11: memref<256x256xbf16, #tpu.memory_space<vmem>>, %arg12: memref<1x256xf32, #tpu.memory_space<vmem>>, %arg13: memref<1xf32, #tpu.memory_space<smem>>, %arg14: memref<256x128xbf16, #tpu.memory_space<vmem>>, %arg15: memref<1x128xf32, #tpu.memory_space<vmem>>, %arg16: memref<16x128xbf16, #tpu.memory_space<vmem>>) attributes {dimension_semantics = [#tpu.dimension_semantics<parallel>], iteration_bounds = array<i64: 1>, scalar_prefetch = 0 : i64, scratch_operands = 0 : i64, tpu.core_type = #tpu.core_type<tc>, window_params = [{transform_indices = @transform_0, window_bounds = array<i64: 16, 3072>}, {pipeline_mode = #tpu.pipeline_mode<synchronous>, transform_indices = @transform_1, window_bounds = array<i64: 3072, 256>}, {pipeline_mode = #tpu.pipeline_mode<synchronous>, transform_indices = @transform_2, window_bounds = array<i64: 1, 256>}, {pipeline_mode = #tpu.pipeline_mode<synchronous>, transform_indices = @transform_3, window_bounds = array<i64: 256, 256>}, {pipeline_mode = #tpu.pipeline_mode<synchronous>, transform_indices = @transform_4, window_bounds = array<i64: 1, 256>}, {pipeline_mode = #tpu.pipeline_mode<synchronous>, transform_indices = @transform_5, window_bounds = array<i64: 256, 256>}, {pipeline_mode = #tpu.pipeline_mode<synchronous>, transform_indices = @transform_6, window_bounds = array<i64: 1, 256>}, {transform_indices = @transform_7, window_bounds = array<i64: 1>}, {pipeline_mode = #tpu.pipeline_mode<synchronous>, transform_indices = @transform_8, window_bounds = array<i64: 256, 256>}, {pipeline_mode = #tpu.pipeline_mode<synchronous>, transform_indices = @transform_9, window_bounds = array<i64: 1, 256>}, {pipeline_mode = #tpu.pipeline_mode<synchronous>, transform_indices = @transform_10, window_bounds = array<i64: 256, 256>}, {pipeline_mode = #tpu.pipeline_mode<synchronous>, transform_indices = @transform_11, window_bounds = array<i64: 1, 256>}, {transform_indices = @transform_12, window_bounds = array<i64: 1>}, {pipeline_mode = #tpu.pipeline_mode<synchronous>, transform_indices = @transform_13, window_bounds = array<i64: 256, 128>}, {pipeline_mode = #tpu.pipeline_mode<synchronous>, transform_indices = @transform_14, window_bounds = array<i64: 1, 128>}, {transform_indices = @transform_15, window_bounds = array<i64: 16, 128>}]} {
    %c0 = arith.constant 0 : index
    %c0_0 = arith.constant 0 : index
    %0 = vector.load %arg1[%c0, %c0_0] : memref<16x3072xf32, #tpu.memory_space<vmem>>, vector<16x3072xf32>
    %1 = arith.truncf %0 : vector<16x3072xf32> to vector<16x3072xbf16>
    %c0_1 = arith.constant 0 : index
    %c0_2 = arith.constant 0 : index
    %2 = vector.load %arg2[%c0_1, %c0_2] : memref<3072x256xbf16, #tpu.memory_space<vmem>>, vector<3072x256xbf16>
    %cst = arith.constant dense<0.000000e+00> : vector<16x256xf32>
    %3 = tpu.matmul %1, %2, %cst {dimension_numbers = #tpu.dot_dimension_numbers<[1], [0], [0], [1], [0, 0, 1, 1], [], []>} : vector<16x3072xbf16>, vector<3072x256xbf16>, vector<16x256xf32> -> vector<16x256xf32>
    %c0_3 = arith.constant 0 : index
    %c0_4 = arith.constant 0 : index
    %4 = vector.load %arg3[%c0_3, %c0_4] : memref<1x256xf32, #tpu.memory_space<vmem>>, vector<1x256xf32>
    %5 = vector.broadcast %4 : vector<1x256xf32> to vector<16x256xf32>
    %6 = arith.addf %3, %5 : vector<16x256xf32>
    %cst_5 = arith.constant 0.000000e+00 : f32
    %7 = vector.broadcast %cst_5 : f32 to vector<16x256xf32>
    %8 = arith.maximumf %6, %7 : vector<16x256xf32>
    %9 = arith.truncf %8 : vector<16x256xf32> to vector<16x256xbf16>
    %c0_6 = arith.constant 0 : index
    %c0_7 = arith.constant 0 : index
    %10 = vector.load %arg4[%c0_6, %c0_7] : memref<256x256xbf16, #tpu.memory_space<vmem>>, vector<256x256xbf16>
    %cst_8 = arith.constant dense<0.000000e+00> : vector<16x256xf32>
    %11 = tpu.matmul %9, %10, %cst_8 {dimension_numbers = #tpu.dot_dimension_numbers<[1], [0], [0], [1], [0, 0, 1, 1], [], []>} : vector<16x256xbf16>, vector<256x256xbf16>, vector<16x256xf32> -> vector<16x256xf32>
    %c0_9 = arith.constant 0 : index
    %c0_10 = arith.constant 0 : index
    %12 = vector.load %arg5[%c0_9, %c0_10] : memref<1x256xf32, #tpu.memory_space<vmem>>, vector<1x256xf32>
    %13 = vector.broadcast %12 : vector<1x256xf32> to vector<16x256xf32>
    %14 = arith.addf %11, %13 : vector<16x256xf32>
    %cst_11 = arith.constant 0.000000e+00 : f32
    %15 = vector.broadcast %cst_11 : f32 to vector<16x256xf32>
    %16 = arith.maximumf %14, %15 : vector<16x256xf32>
    %c0_12 = arith.constant 0 : index
    %17 = memref.load %arg8[%c0_12] : memref<1xf32, #tpu.memory_space<smem>>
    %18 = arith.truncf %16 : vector<16x256xf32> to vector<16x256xbf16>
    %c0_13 = arith.constant 0 : index
    %c0_14 = arith.constant 0 : index
    %19 = vector.load %arg6[%c0_13, %c0_14] : memref<256x256xbf16, #tpu.memory_space<vmem>>, vector<256x256xbf16>
    %cst_15 = arith.constant dense<0.000000e+00> : vector<16x256xf32>
    %20 = tpu.matmul %18, %19, %cst_15 {dimension_numbers = #tpu.dot_dimension_numbers<[1], [0], [0], [1], [0, 0, 1, 1], [], []>} : vector<16x256xbf16>, vector<256x256xbf16>, vector<16x256xf32> -> vector<16x256xf32>
    %c0_16 = arith.constant 0 : index
    %c0_17 = arith.constant 0 : index
    %21 = vector.load %arg7[%c0_16, %c0_17] : memref<1x256xf32, #tpu.memory_space<vmem>>, vector<1x256xf32>
    %22 = vector.broadcast %21 : vector<1x256xf32> to vector<16x256xf32>
    %23 = arith.addf %20, %22 : vector<16x256xf32>
    %cst_18 = arith.constant 0.000000e+00 : f32
    %24 = vector.broadcast %cst_18 : f32 to vector<16x256xf32>
    %25 = arith.maximumf %23, %24 : vector<16x256xf32>
    %26 = vector.broadcast %17 : f32 to vector<16x256xf32>
    %27 = arith.mulf %25, %26 : vector<16x256xf32>
    %cst_19 = arith.constant 1.000000e+00 : f32
    %28 = arith.subf %cst_19, %17 : f32
    %29 = vector.broadcast %28 : f32 to vector<16x256xf32>
    %30 = arith.mulf %16, %29 : vector<16x256xf32>
    %31 = arith.addf %27, %30 : vector<16x256xf32>
    %32 = arith.truncf %31 : vector<16x256xf32> to vector<16x256xbf16>
    %c0_20 = arith.constant 0 : index
    %c0_21 = arith.constant 0 : index
    %33 = vector.load %arg9[%c0_20, %c0_21] : memref<256x256xbf16, #tpu.memory_space<vmem>>, vector<256x256xbf16>
    %cst_22 = arith.constant dense<0.000000e+00> : vector<16x256xf32>
    %34 = tpu.matmul %32, %33, %cst_22 {dimension_numbers = #tpu.dot_dimension_numbers<[1], [0], [0], [1], [0, 0, 1, 1], [], []>} : vector<16x256xbf16>, vector<256x256xbf16>, vector<16x256xf32> -> vector<16x256xf32>
    %c0_23 = arith.constant 0 : index
    %c0_24 = arith.constant 0 : index
    %35 = vector.load %arg10[%c0_23, %c0_24] : memref<1x256xf32, #tpu.memory_space<vmem>>, vector<1x256xf32>
    %36 = vector.broadcast %35 : vector<1x256xf32> to vector<16x256xf32>
    %37 = arith.addf %34, %36 : vector<16x256xf32>
    %cst_25 = arith.constant 0.000000e+00 : f32
    %38 = vector.broadcast %cst_25 : f32 to vector<16x256xf32>
    %39 = arith.maximumf %37, %38 : vector<16x256xf32>
    %c0_26 = arith.constant 0 : index
    %40 = memref.load %arg13[%c0_26] : memref<1xf32, #tpu.memory_space<smem>>
    %41 = arith.truncf %39 : vector<16x256xf32> to vector<16x256xbf16>
    %c0_27 = arith.constant 0 : index
    %c0_28 = arith.constant 0 : index
    %42 = vector.load %arg11[%c0_27, %c0_28] : memref<256x256xbf16, #tpu.memory_space<vmem>>, vector<256x256xbf16>
    %cst_29 = arith.constant dense<0.000000e+00> : vector<16x256xf32>
    %43 = tpu.matmul %41, %42, %cst_29 {dimension_numbers = #tpu.dot_dimension_numbers<[1], [0], [0], [1], [0, 0, 1, 1], [], []>} : vector<16x256xbf16>, vector<256x256xbf16>, vector<16x256xf32> -> vector<16x256xf32>
    %c0_30 = arith.constant 0 : index
    %c0_31 = arith.constant 0 : index
    %44 = vector.load %arg12[%c0_30, %c0_31] : memref<1x256xf32, #tpu.memory_space<vmem>>, vector<1x256xf32>
    %45 = vector.broadcast %44 : vector<1x256xf32> to vector<16x256xf32>
    %46 = arith.addf %43, %45 : vector<16x256xf32>
    %cst_32 = arith.constant 0.000000e+00 : f32
    %47 = vector.broadcast %cst_32 : f32 to vector<16x256xf32>
    %48 = arith.maximumf %46, %47 : vector<16x256xf32>
    %49 = vector.broadcast %40 : f32 to vector<16x256xf32>
    %50 = arith.mulf %48, %49 : vector<16x256xf32>
    %cst_33 = arith.constant 1.000000e+00 : f32
    %51 = arith.subf %cst_33, %40 : f32
    %52 = vector.broadcast %51 : f32 to vector<16x256xf32>
    %53 = arith.mulf %39, %52 : vector<16x256xf32>
    %54 = arith.addf %50, %53 : vector<16x256xf32>
    %55 = arith.truncf %54 : vector<16x256xf32> to vector<16x256xbf16>
    %c0_34 = arith.constant 0 : index
    %c0_35 = arith.constant 0 : index
    %56 = vector.load %arg14[%c0_34, %c0_35] : memref<256x128xbf16, #tpu.memory_space<vmem>>, vector<256x128xbf16>
    %cst_36 = arith.constant dense<0.000000e+00> : vector<16x128xf32>
    %57 = tpu.matmul %55, %56, %cst_36 {dimension_numbers = #tpu.dot_dimension_numbers<[1], [0], [0], [1], [0, 0, 1, 1], [], []>} : vector<16x256xbf16>, vector<256x128xbf16>, vector<16x128xf32> -> vector<16x128xf32>
    %c0_37 = arith.constant 0 : index
    %c0_38 = arith.constant 0 : index
    %58 = vector.load %arg15[%c0_37, %c0_38] : memref<1x128xf32, #tpu.memory_space<vmem>>, vector<1x128xf32>
    %59 = vector.broadcast %58 : vector<1x128xf32> to vector<16x128xf32>
    %60 = arith.addf %57, %59 : vector<16x128xf32>
    %61 = arith.truncf %60 : vector<16x128xf32> to vector<16x128xbf16>
    %c0_39 = arith.constant 0 : index
    %c0_40 = arith.constant 0 : index
    %62 = vector.load %arg16[%c0_39, %c0_40] : memref<16x128xbf16, #tpu.memory_space<vmem>>, vector<16x128xbf16>
    tpu.vector_store %arg16[%c0_39, %c0_40], %61 {strides = array<i32>} : memref<16x128xbf16, #tpu.memory_space<vmem>>, vector<16x128xbf16>,
    return
  }
  func.func @transform_0(%arg0: i32) -> (i32, i32) {
    %c0_i32 = arith.constant 0 : i32
    %c0_i32_0 = arith.constant 0 : i32
    return %arg0, %c0_i32 : i32, i32
  }
  func.func @transform_1(%arg0: i32) -> (i32, i32) {
    %c0_i32 = arith.constant 0 : i32
    %c0_i32_0 = arith.constant 0 : i32
    %c0_i32_1 = arith.constant 0 : i32
    return %c0_i32, %c0_i32_0 : i32, i32
  }
  func.func @transform_2(%arg0: i32) -> (i32, i32) {
    %c0_i32 = arith.constant 0 : i32
    %c0_i32_0 = arith.constant 0 : i32
    %c0_i32_1 = arith.constant 0 : i32
    return %c0_i32, %c0_i32_0 : i32, i32
  }
  func.func @transform_3(%arg0: i32) -> (i32, i32) {
    %c0_i32 = arith.constant 0 : i32
    %c0_i32_0 = arith.constant 0 : i32
    %c0_i32_1 = arith.constant 0 : i32
    return %c0_i32, %c0_i32_0 : i32, i32
  }
  func.func @transform_4(%arg0: i32) -> (i32, i32) {
    %c0_i32 = arith.constant 0 : i32
    %c0_i32_0 = arith.constant 0 : i32
    %c0_i32_1 = arith.constant 0 : i32
    return %c0_i32, %c0_i32_0 : i32, i32
  }
  func.func @transform_5(%arg0: i32) -> (i32, i32) {
    %c0_i32 = arith.constant 0 : i32
    %c0_i32_0 = arith.constant 0 : i32
    %c0_i32_1 = arith.constant 0 : i32
    return %c0_i32, %c0_i32_0 : i32, i32
  }
  func.func @transform_6(%arg0: i32) -> (i32, i32) {
    %c0_i32 = arith.constant 0 : i32
    %c0_i32_0 = arith.constant 0 : i32
    %c0_i32_1 = arith.constant 0 : i32
    return %c0_i32, %c0_i32_0 : i32, i32
  }
  func.func @transform_7(%arg0: i32) -> i32 {
    %c0_i32 = arith.constant 0 : i32
    %c0_i32_0 = arith.constant 0 : i32
    return %c0_i32 : i32
  }
  func.func @transform_8(%arg0: i32) -> (i32, i32) {
    %c0_i32 = arith.constant 0 : i32
    %c0_i32_0 = arith.constant 0 : i32
    %c0_i32_1 = arith.constant 0 : i32
    return %c0_i32, %c0_i32_0 : i32, i32
  }
  func.func @transform_9(%arg0: i32) -> (i32, i32) {
    %c0_i32 = arith.constant 0 : i32
    %c0_i32_0 = arith.constant 0 : i32
    %c0_i32_1 = arith.constant 0 : i32
    return %c0_i32, %c0_i32_0 : i32, i32
  }
  func.func @transform_10(%arg0: i32) -> (i32, i32) {
    %c0_i32 = arith.constant 0 : i32
    %c0_i32_0 = arith.constant 0 : i32
    %c0_i32_1 = arith.constant 0 : i32
    return %c0_i32, %c0_i32_0 : i32, i32
  }
  func.func @transform_11(%arg0: i32) -> (i32, i32) {
    %c0_i32 = arith.constant 0 : i32
    %c0_i32_0 = arith.constant 0 : i32
    %c0_i32_1 = arith.constant 0 : i32
    return %c0_i32, %c0_i32_0 : i32, i32
  }
  func.func @transform_12(%arg0: i32) -> i32 {
    %c0_i32 = arith.constant 0 : i32
    %c0_i32_0 = arith.constant 0 : i32
    return %c0_i32 : i32
  }
  func.func @transform_13(%arg0: i32) -> (i32, i32) {
    %c0_i32 = arith.constant 0 : i32
    %c0_i32_0 = arith.constant 0 : i32
    %c0_i32_1 = arith.constant 0 : i32
    return %c0_i32, %c0_i32_0 : i32, i32
  }
  func.func @transform_14(%arg0: i32) -> (i32, i32) {
    %c0_i32 = arith.constant 0 : i32
    %c0_i32_0 = arith.constant 0 : i32
    %c0_i32_1 = arith.constant 0 : i32
    return %c0_i32, %c0_i32_0 : i32, i32
  }
  func.func @transform_15(%arg0: i32) -> (i32, i32) {
    %c0_i32 = arith.constant 0 : i32
    %c0_i32_0 = arith.constant 0 : i32
    return %arg0, %c0_i32 : i32, i32
  }
}

</mosaic_0001>

<bundles_post_ra>
// kernel: _skipnet_forward.1
= control target key start
LH: loop header
LB: loop body
LE: loop exit
PB: predicated region body
PF: predicated region fallthrough
CT: control target
= control target key end

     0   :  { %22 = vsyncpa [#allocation5], 0  ;;  %s6527_s0 = inlined_call_operand.vmem [shape: f32[16,3072], index: 0, kind: input, shape index: {}]   ;;  %s6528_s1 = inlined_call_operand.hbm [shape: bf16[3072,256], index: 1, kind: input, shape index: {}]   ;;  %s6529_s2 = inlined_call_operand.hbm [shape: f32[1,256], index: 2, kind: input, shape index: {}]   ;;  %s6530_s3 = inlined_call_operand.hbm [shape: bf16[256,256], index: 3, kind: input, shape index: {}]   ;;  %s6531_s4 = inlined_call_operand.hbm [shape: f32[1,256], index: 4, kind: input, shape index: {}]   ;;  %s6532_s5 = inlined_call_operand.hbm [shape: bf16[256,256], index: 5, kind: input, shape index: {}]   ;;  %s6533_s6 = inlined_call_operand.hbm [shape: f32[1,256], index: 6, kind: input, shape index: {}]   ;;  %s6534_s7 = inlined_call_operand.<no memory space> [shape: f32[1], index: 7, kind: input, shape index: {}]   ;;  %s6535_s8 = inlined_call_operand.hbm [shape: bf16[256,256], index: 8, kind: input, shape index: {}]   ;;  %s6536_s9 = inlined_call_operand.hbm [shape: f32[1,256], index: 9, kind: input, shape index: {}]   ;;  %s6537_s10 = inlined_call_operand.hbm [shape: bf16[256,256], index: 10, kind: input, shape index: {}]   ;;  %s6538_s11 = inlined_call_operand.hbm [shape: f32[1,256], index: 11, kind: input, shape index: {}]   ;;  %s6539_s12 = inlined_call_operand.<no memory space> [shape: f32[1], index: 12, kind: input, shape index: {}]   ;;  %s6540_s13 = inlined_call_operand.hbm [shape: bf16[256,128], index: 13, kind: input, shape index: {}]   ;;  %s6541_s14 = inlined_call_operand.hbm [shape: f32[1,128], index: 14, kind: input, shape index: {}]   ;;  %s6542_s15 = inlined_call_operand.vmem [shape: bf16[16,128], index: 15, kind: output, shape index: {}]  }
   0x1   :  { %23 = vsyncpa [#allocation7], 0 }
   0x2   :  { %24 = vsyncpa [#allocation10], 0 }
   0x3   :  { %25 = vsyncpa [#allocation13], 0 }
   0x4   :  { %26 = vsyncpa [#allocation16], 0 }
   0x5   :  { %27 = vsyncpa [#allocation19], 0 }
   0x6   :  { %28 = vsyncpa [#allocation22], 0  ;;  %s6041_s18 = smov [#allocation6]   ;;  %s6042_s20 = smov [#allocation9]  }
   0x7   :  { %s49_s19 = sshll.u32 %s6041_s18, 4  ;;  %s71_s21 = sshll.u32 %s6042_s20, 4  ;;  %s50_s19 = int_to_ptr.vmem [resolvable:$true] %s49_s19  ;;  %s72_s21 = int_to_ptr.vmem [resolvable:$true] %s71_s21 }
   0x8   :  { %s5763_s24 = scalar_lea.hbm %s6529_s2, 32 }
   0x9   :  { %p5764_p0 = scmp.ne.s32.totalorder %s6529_s2, %s5763_s24  ;;  %p5767_p1 = scmp.lt.u32.totalorder %s5763_s24, %s6529_s2 }
   0xb   :  { %p5769_p2 = pnand %p5767_p1, %p5764_p0 }
   0xd   :  { %5772 = shalt.err (!%p5769_p2)
}
   0xe   :  { %s5773_s29 = scalar_lea.vmem %s50_s19, 32  ;;  %p5778_p4 = scmp.lt.s32.totalorder %s50_s19, %s50_s19 }
   0xf   :  { %p5774_p3 = scmp.ne.s32.totalorder %s50_s19, %s5773_s29  ;;  %p5779_p5 = scmp.lt.s32.totalorder %s5773_s29, %s5773_s29 }
  0x11   :  { %p5780_p6 = por %p5779_p5, %p5778_p4 }
  0x13   :  { %p5781_p7 = pnand %p5780_p6, %p5774_p3 }
  0x15   :  { %5784 = shalt.err (!%p5781_p7)
}
  0x16   :  { %52 = dma.hbm_to_vmem [thread:$0]  %s6529_s2, 32, %s50_s19, [#allocation7]  }
  0x17   :  { %s5785_s20 = scalar_lea.hbm %s6531_s4, 32 }
  0x18   :  { %p5786_p8 = scmp.ne.s32.totalorder %s6531_s4, %s5785_s20  ;;  %p5789_p9 = scmp.lt.u32.totalorder %s5785_s20, %s6531_s4 }
  0x1a   :  { %p5791_p10 = pnand %p5789_p9, %p5786_p8 }
  0x1c   :  { %5794 = shalt.err (!%p5791_p10)
}
  0x1d   :  { %s5795_s26 = scalar_lea.vmem %s72_s21, 32  ;;  %p5800_p12 = scmp.lt.s32.totalorder %s72_s21, %s72_s21 }
  0x1e   :  { %p5796_p11 = scmp.ne.s32.totalorder %s72_s21, %s5795_s26  ;;  %p5801_p13 = scmp.lt.s32.totalorder %s5795_s26, %s5795_s26 }
  0x20   :  { %p5802_p0 = por %p5801_p13, %p5800_p12 }
  0x22   :  { %p5803_p1 = pnand %p5802_p0, %p5796_p11 }
  0x24   :  { %5806 = shalt.err (!%p5803_p1)
}
  0x25   :  { %74 = dma.hbm_to_vmem [thread:$0]  %s6531_s4, 32, %s72_s21, [#allocation10]  }
  0x26   :  { %s6043_s27 = smov [#allocation12]   ;;  %s6044_s29 = smov [#allocation15]  }
  0x27   :  { %s93_s28 = sshll.u32 %s6043_s27, 4  ;;  %s117_s30 = sshll.u32 %s6044_s29, 4  ;;  %s94_s28 = int_to_ptr.vmem [resolvable:$true] %s93_s28  ;;  %s118_s30 = int_to_ptr.vmem [resolvable:$true] %s117_s30 }
  0x28   :  { %s5807_s18 = scalar_lea.hbm %s6533_s6, 32 }
  0x29   :  { %p5808_p2 = scmp.ne.s32.totalorder %s6533_s6, %s5807_s18  ;;  %p5811_p3 = scmp.lt.u32.totalorder %s5807_s18, %s6533_s6 }
  0x2b   :  { %p5813_p4 = pnand %p5811_p3, %p5808_p2 }
  0x2d   :  { %5816 = shalt.err (!%p5813_p4)
}
  0x2e   :  { %s5817_s4 = scalar_lea.vmem %s94_s28, 32  ;;  %p5822_p6 = scmp.lt.s32.totalorder %s94_s28, %s94_s28 }
  0x2f   :  { %p5818_p5 = scmp.ne.s32.totalorder %s94_s28, %s5817_s4  ;;  %p5823_p7 = scmp.lt.s32.totalorder %s5817_s4, %s5817_s4 }
  0x31   :  { %p5824_p8 = por %p5823_p7, %p5822_p6 }
  0x33   :  { %p5825_p9 = pnand %p5824_p8, %p5818_p5 }
  0x35   :  { %5828 = shalt.err (!%p5825_p9)
}
  0x36   :  { %96 = dma.hbm_to_vmem [thread:$0]  %s6533_s6, 32, %s94_s28, [#allocation13]  }
  0x37   :  { %s5829_s19 = scalar_lea.hbm %s6536_s9, 32 }
  0x38   :  { %p5830_p10 = scmp.ne.s32.totalorder %s6536_s9, %s5829_s19  ;;  %p5833_p11 = scmp.lt.u32.totalorder %s5829_s19, %s6536_s9 }
  0x3a   :  { %p5835_p12 = pnand %p5833_p11, %p5830_p10 }
  0x3c   :  { %5838 = shalt.err (!%p5835_p12)
}
  0x3d   :  { %s5839_s18 = scalar_lea.vmem %s118_s30, 32  ;;  %p5844_p0 = scmp.lt.s32.totalorder %s118_s30, %s118_s30 }
  0x3e   :  { %p5840_p13 = scmp.ne.s32.totalorder %s118_s30, %s5839_s18  ;;  %p5845_p1 = scmp.lt.s32.totalorder %s5839_s18, %s5839_s18 }
  0x40   :  { %p5846_p2 = por %p5845_p1, %p5844_p0 }
  0x42   :  { %p5847_p3 = pnand %p5846_p2, %p5840_p13 }
  0x44   :  { %5850 = shalt.err (!%p5847_p3)
}
  0x45   :  { %120 = dma.hbm_to_vmem [thread:$0]  %s6536_s9, 32, %s118_s30, [#allocation16]  }
  0x46   :  { %s6045_s20 = smov [#allocation18]   ;;  %s6046_s23 = smov [#allocation4]  }
  0x47   :  { %s139_s22 = sshll.u32 %s6045_s20, 4  ;;  %s36_s24 = sshll.u32 %s6046_s23, 4  ;;  %s140_s22 = int_to_ptr.vmem [resolvable:$true] %s139_s22  ;;  %s6185_s24 = int_to_ptr.vmem [resolvable:$true] %s36_s24 }
  0x48   :  { %s5851_s25 = scalar_lea.hbm %s6538_s11, 32 }
  0x49   :  { %p5852_p4 = scmp.ne.s32.totalorder %s6538_s11, %s5851_s25  ;;  %p5855_p5 = scmp.lt.u32.totalorder %s5851_s25, %s6538_s11 }
  0x4b   :  { %p5857_p6 = pnand %p5855_p5, %p5852_p4 }
  0x4d   :  { %5860 = shalt.err (!%p5857_p6)
}
  0x4e   :  { %s5861_s9 = scalar_lea.vmem %s140_s22, 32  ;;  %p5866_p8 = scmp.lt.s32.totalorder %s140_s22, %s140_s22 }
  0x4f   :  { %p5862_p7 = scmp.ne.s32.totalorder %s140_s22, %s5861_s9  ;;  %p5867_p9 = scmp.lt.s32.totalorder %s5861_s9, %s5861_s9 }
  0x51   :  { %p5868_p10 = por %p5867_p9, %p5866_p8 }
  0x53   :  { %p5869_p11 = pnand %p5868_p10, %p5862_p7 }
  0x55   :  { %5872 = shalt.err (!%p5869_p11)
}
  0x56   :  { %142 = dma.hbm_to_vmem [thread:$0]  %s6538_s11, 32, %s140_s22, [#allocation19]  }
  0x57   :  { %s5873_s18 = scalar_lea.hbm %s6528_s1, 49152 }
  0x58   :  { %p5874_p12 = scmp.ne.s32.totalorder %s6528_s1, %s5873_s18  ;;  %p5877_p13 = scmp.lt.u32.totalorder %s5873_s18, %s6528_s1 }
  0x5a   :  { %p5879_p0 = pnand %p5877_p13, %p5874_p12 }
  0x5c   :  { %5882 = shalt.err (!%p5879_p0)
}
  0x5d   :  { %s5883_s4 = scalar_lea.vmem %s6185_s24, 49152  ;;  %p5888_p2 = scmp.lt.s32.totalorder %s6185_s24, %s6185_s24 }
  0x5e   :  { %p5884_p1 = scmp.ne.s32.totalorder %s6185_s24, %s5883_s4  ;;  %p5889_p3 = scmp.lt.s32.totalorder %s5883_s4, %s5883_s4 }
  0x60   :  { %p5890_p4 = por %p5889_p3, %p5888_p2 }
  0x62   :  { %p5891_p5 = pnand %p5890_p4, %p5884_p1 }
  0x64   :  { %5894 = shalt.err (!%p5891_p5)
}
  0x65   :  { %s6047_s11 = smov 128   ;;  %s6048_s22 = smov 8  }
  0x66   :  { %42 = dma.hbm_to_vmem [thread:$0]  %s6528_s1, 49152, %s6185_s24, [#allocation5], %s6047_s11, %s6047_s11, %s6048_s22  }
  0x67   :  { %s6049_s26 = smov [#allocation8]   ;;  %s6050_s19 = smov [#allocation11]  }
  0x68   :  { %s58_s2 = sshll.u32 %s6049_s26, 4  ;;  %s80_s27 = sshll.u32 %s6050_s19, 4  ;;  %s59_s2 = int_to_ptr.vmem [resolvable:$true] %s58_s2  ;;  %s6219_s27 = int_to_ptr.vmem [resolvable:$true] %s80_s27 }
  0x69   :  { %s5895_s29 = scalar_lea.hbm %s6530_s3, 4096 }
  0x6a   :  { %p5896_p6 = scmp.ne.s32.totalorder %s6530_s3, %s5895_s29  ;;  %p5899_p7 = scmp.lt.u32.totalorder %s5895_s29, %s6530_s3 }
  0x6c   :  { %p5901_p8 = pnand %p5899_p7, %p5896_p6 }
  0x6e   :  { %5904 = shalt.err (!%p5901_p8)
}
  0x6f   :  { %s5905_s1 = scalar_lea.vmem %s59_s2, 4096  ;;  %p5910_p10 = scmp.lt.s32.totalorder %s59_s2, %s59_s2 }
  0x70   :  { %p5906_p9 = scmp.ne.s32.totalorder %s59_s2, %s5905_s1  ;;  %p5911_p11 = scmp.lt.s32.totalorder %s5905_s1, %s5905_s1 }
  0x72   :  { %p5912_p12 = por %p5911_p11, %p5910_p10 }
  0x74   :  { %p5913_p13 = pnand %p5912_p12, %p5906_p9 }
  0x76   :  { %5916 = shalt.err (!%p5913_p13)
}
  0x77   :  { %64 = dma.hbm_to_vmem [thread:$0]  %s6530_s3, 4096, %s59_s2, [#allocation7], %s6047_s11, %s6047_s11, %s6048_s22  }
  0x78   :  { %s5917_s4 = scalar_lea.hbm %s6532_s5, 4096 }
  0x79   :  { %p5918_p0 = scmp.ne.s32.totalorder %s6532_s5, %s5917_s4  ;;  %p5921_p1 = scmp.lt.u32.totalorder %s5917_s4, %s6532_s5 }
  0x7b   :  { %p5923_p2 = pnand %p5921_p1, %p5918_p0 }
  0x7d   :  { %5926 = shalt.err (!%p5923_p2)
}
  0x7e   :  { %s5927_s9 = scalar_lea.vmem %s6219_s27, 4096  ;;  %p5932_p4 = scmp.lt.s32.totalorder %s6219_s27, %s6219_s27 }
  0x7f   :  { %p5928_p3 = scmp.ne.s32.totalorder %s6219_s27, %s5927_s9  ;;  %p5933_p5 = scmp.lt.s32.totalorder %s5927_s9, %s5927_s9 }
  0x81   :  { %p5934_p6 = por %p5933_p5, %p5932_p4 }
  0x83   :  { %p5935_p7 = pnand %p5934_p6, %p5928_p3 }
  0x85   :  { %5938 = shalt.err (!%p5935_p7)
}
  0x86   :  { %86 = dma.hbm_to_vmem [thread:$0]  %s6532_s5, 4096, %s6219_s27, [#allocation10], %s6047_s11, %s6047_s11, %s6048_s22  }
  0x87   :  { %s6051_s30 = smov [#allocation14]   ;;  %s6052_s16 = smov [#allocation17]  }
  0x88   :  { %s104_s29 = sshll.u32 %s6051_s30, 4  ;;  %s126_s17 = sshll.u32 %s6052_s16, 4  ;;  %s105_s29 = int_to_ptr.vmem [resolvable:$true] %s104_s29  ;;  %s6256_s17 = int_to_ptr.vmem [resolvable:$true] %s126_s17 }
  0x89   :  { %s5939_s1 = scalar_lea.hbm %s6535_s8, 4096 }
  0x8a   :  { %p5940_p8 = scmp.ne.s32.totalorder %s6535_s8, %s5939_s1  ;;  %p5943_p9 = scmp.lt.u32.totalorder %s5939_s1, %s6535_s8 }
  0x8c   :  { %p5945_p10 = pnand %p5943_p9, %p5940_p8 }
  0x8e   :  { %5948 = shalt.err (!%p5945_p10)
}
  0x8f   :  { %s5949_s5 = scalar_lea.vmem %s105_s29, 4096  ;;  %p5954_p12 = scmp.lt.s32.totalorder %s105_s29, %s105_s29 }
  0x90   :  { %p5950_p11 = scmp.ne.s32.totalorder %s105_s29, %s5949_s5  ;;  %p5955_p13 = scmp.lt.s32.totalorder %s5949_s5, %s5949_s5 }
  0x92   :  { %p5956_p0 = por %p5955_p13, %p5954_p12 }
  0x94   :  { %p5957_p1 = pnand %p5956_p0, %p5950_p11 }
  0x96   :  { %5960 = shalt.err (!%p5957_p1)
}
  0x97   :  { %110 = dma.hbm_to_vmem [thread:$0]  %s6535_s8, 4096, %s105_s29, [#allocation13], %s6047_s11, %s6047_s11, %s6048_s22  }
  0x98   :  { %s5961_s26 = scalar_lea.hbm %s6537_s10, 4096 }
  0x99   :  { %p5962_p2 = scmp.ne.s32.totalorder %s6537_s10, %s5961_s26  ;;  %p5965_p3 = scmp.lt.u32.totalorder %s5961_s26, %s6537_s10 }
  0x9b   :  { %p5967_p4 = pnand %p5965_p3, %p5962_p2 }
  0x9d   :  { %5970 = shalt.err (!%p5967_p4)
}
  0x9e   :  { %s5971_s30 = scalar_lea.vmem %s6256_s17, 4096  ;;  %p5976_p6 = scmp.lt.s32.totalorder %s6256_s17, %s6256_s17 }
  0x9f   :  { %p5972_p5 = scmp.ne.s32.totalorder %s6256_s17, %s5971_s30  ;;  %p5977_p7 = scmp.lt.s32.totalorder %s5971_s30, %s5971_s30 }
  0xa1   :  { %p5978_p8 = por %p5977_p7, %p5976_p6 }
  0xa3   :  { %p5979_p9 = pnand %p5978_p8, %p5972_p5 }
  0xa5   :  { %5982 = shalt.err (!%p5979_p9)
}
  0xa6   :  { %132 = dma.hbm_to_vmem [thread:$0]  %s6537_s10, 4096, %s6256_s17, [#allocation16], %s6047_s11, %s6047_s11, %s6048_s22  }
  0xa7   :  { %s6053_s16 = smov [#allocation20]   ;;  %s5983_s24 = scalar_lea.hbm %s6540_s13, 2048 }
  0xa8   :  { %s150_s18 = sshll.u32 %s6053_s16, 4  ;;  %p5984_p10 = scmp.ne.s32.totalorder %s6540_s13, %s5983_s24  ;;  %s151_s18 = int_to_ptr.vmem [resolvable:$true] %s150_s18 }
  0xa9   :  { %p5987_p11 = scmp.lt.u32.totalorder %s5983_s24, %s6540_s13 }
  0xab   :  { %p5989_p12 = pnand %p5987_p11, %p5984_p10 }
  0xad   :  { %5992 = shalt.err (!%p5989_p12)
}
  0xae   :  { %s5993_s27 = scalar_lea.vmem %s151_s18, 2048  ;;  %p5998_p0 = scmp.lt.s32.totalorder %s151_s18, %s151_s18 }
  0xaf   :  { %p5994_p13 = scmp.ne.s32.totalorder %s151_s18, %s5993_s27  ;;  %p5999_p1 = scmp.lt.s32.totalorder %s5993_s27, %s5993_s27 }
  0xb1   :  { %p6000_p2 = por %p5999_p1, %p5998_p0 }
  0xb3   :  { %p6001_p3 = pnand %p6000_p2, %p5994_p13 }
  0xb5   :  { %6004 = shalt.err (!%p6001_p3)
}
  0xb6   :  { %s6054_s10 = smov 64   ;;  %s6055_s11 = smov 4  }
  0xb7   :  { %156 = dma.hbm_to_vmem [thread:$0]  %s6540_s13, 2048, %s151_s18, [#allocation19], %s6054_s10, %s6054_s10, %s6055_s11  }
  0xb8   :  { %s6056_s4 = smov [#allocation21]   ;;  %s6005_s19 = scalar_lea.hbm %s6541_s14, 16 }
  0xb9   :  { %s163_s21 = sshll.u32 %s6056_s4, 4  ;;  %p6006_p4 = scmp.ne.s32.totalorder %s6541_s14, %s6005_s19  ;;  %s164_s21 = int_to_ptr.vmem [resolvable:$true] %s163_s21 }
  0xba   :  { %p6009_p5 = scmp.lt.u32.totalorder %s6005_s19, %s6541_s14 }
  0xbc   :  { %p6011_p6 = pnand %p6009_p5, %p6006_p4 }
  0xbe   :  { %6014 = shalt.err (!%p6011_p6)
}
  0xbf   :  { %s6015_s8 = scalar_lea.vmem %s164_s21, 16  ;;  %s6019_s13 = scalar_lea.vmem %s164_s21, 32 }
  0xc0   :  { %p6016_p7 = scmp.ne.s32.totalorder %s164_s21, %s6015_s8  ;;  %p6020_p8 = scmp.lt.s32.totalorder %s164_s21, %s164_s21 }
  0xc1   :  { %p6021_p9 = scmp.lt.s32.totalorder %s6019_s13, %s6015_s8 }
  0xc3   :  { %p6022_p10 = por %p6021_p9, %p6020_p8 }
  0xc5   :  { %p6023_p11 = pnand %p6022_p10, %p6016_p7 }
  0xc7   :  { %6026 = shalt.err (!%p6023_p11)
}
  0xc8   :  { %166 = dma.hbm_to_vmem [thread:$0]  %s6541_s14, 16, %s164_s21, [#allocation22]  }
  0xc9   :  { %6027 = dma.done.wait [#allocation5], 49152  }
  0xca   :  { %6028 = vsyncadd [#allocation5], 4294918144 }
  0xcb   :  { %6029 = dma.done.wait [#allocation7], 4128  }
  0xcc   :  { %6030 = vsyncadd [#allocation7], 4294963168 }
  0xcd   :  { %6031 = dma.done.wait [#allocation10], 4128  }
  0xce   :  { %6032 = vsyncadd [#allocation10], 4294963168 }
  0xcf   :  { %6033 = dma.done.wait [#allocation13], 4128  }
  0xd0   :  { %6034 = vsyncadd [#allocation13], 4294963168 }
  0xd1   :  { %6035 = dma.done.wait [#allocation16], 4128  }
  0xd2   :  { %6036 = vsyncadd [#allocation16], 4294963168 }
  0xd3   :  { %6037 = dma.done.wait [#allocation19], 2080  }
  0xd4   :  { %6038 = vsyncadd [#allocation19], 4294965216 }
  0xd5   :  { %6039 = dma.done.wait [#allocation22], 16  }
  0xd6   :  { %6040 = vsyncadd [#allocation22], 4294967280  ;;  %v4979_v0 = vld [vmem:[#allocation4 + $0x404] ss:$8 sps:$4 sm:$0xff]   ;;  %v4981_v1 = vld [vmem:[#allocation4 + $0x400] ss:$8 sps:$4 sm:$0xff]  }
  0xd7   :  { %2764 = vmatprep.subr.bf16.mxu0 %v4979_v0  ;;  %v4982_v2 = vld [vmem:[#allocation4 + $0x414] ss:$8 sps:$4 sm:$0xff]   ;;  %v4984_v3 = vld [vmem:[#allocation4 + $0x410] ss:$8 sps:$4 sm:$0xff]   ;;  %v4985_v4 = vld [vmem:[#allocation4 + $0x424] ss:$8 sps:$4 sm:$0xff]  }
  0xd8   :  { %2765 = vmatpush1.bf16.msra.mxu0 %v4981_v1  ;;  %v4987_v5 = vld [vmem:[#allocation4 + $0x420] ss:$8 sps:$4 sm:$0xff]   ;;  %v4988_v6 = vld [vmem:[#allocation4 + $0x434] ss:$8 sps:$4 sm:$0xff]   ;;  %v4990_v7 = vld [vmem:[#allocation4 + $0x430] ss:$8 sps:$4 sm:$0xff]  }
  0xd9   :  { %2766 = vmatprep.subr.bf16.mxu0 %v4982_v2  ;;  %v4991_v8 = vld [vmem:[#allocation4 + $0x444] ss:$8 sps:$4 sm:$0xff]   ;;  %v4993_v9 = vld [vmem:[#allocation4 + $0x440] ss:$8 sps:$4 sm:$0xff]   ;;  %v4994_v10 = vld [vmem:[#allocation4 + $0x454] ss:$8 sps:$4 sm:$0xff]  }
  0xda   :  { %v4996_v11 = vld [vmem:[#allocation4 + $0x450] ss:$8 sps:$4 sm:$0xff]   ;;  %v4997_v12 = vld [vmem:[#allocation4 + $0x464] ss:$8 sps:$4 sm:$0xff]   ;;  %v4999_v14 = vld [vmem:[#allocation4 + $0x460] ss:$8 sps:$4 sm:$0xff]  }
  0xdb   :  { %v5024_v13 = vld [vmem:[#allocation4 + $0x4] ss:$8 sps:$4 sm:$0xff]   ;;  %v5000_v15 = vld [vmem:[#allocation4 + $0x474] ss:$8 sps:$4 sm:$0xff]   ;;  %v5028_v16 = vld [vmem:[#allocation4] ss:$8 sps:$4 sm:$0xff]  }
  0xdc   :  { %2767 = vmatpush1.bf16.msra.mxu0 %v4984_v3  ;;  %2592 = vmatprep.subr.bf16.mxu1 %v5024_v13  ;;  %v5030_v17 = vld [vmem:[#allocation4 + $0x14] ss:$8 sps:$4 sm:$0xff]   ;;  %v213_v18 = vld [vmem:[%s6527_s0 + $0x48] sm:$0xff]  ;;  %v5035_v21 = vld [vmem:[#allocation4 + $0x10] ss:$8 sps:$4 sm:$0xff]   ;;  %s3624_s25 = ssub.f32 1.0, %s6534_s7 }
  0xdd   :  { %2768 = vmatprep.subr.bf16.mxu0 %v4985_v4  ;;  %2593 = vmatpush1.bf16.msra.mxu1 %v5028_v16  ;;  %v237_v19 = vld [vmem:[%s6527_s0 + $0x108] sm:$0xff]  ;;  %v5002_v22 = vld [vmem:[#allocation4 + $0x470] ss:$8 sps:$4 sm:$0xff]   ;;  %v5042_v26 = vld [vmem:[#allocation4 + $0x34] ss:$8 sps:$4 sm:$0xff]   ;;  %s4146_s3 = ssub.f32 1.0, %s6539_s12 }
  0xde   :  { %2594 = vmatprep.subr.bf16.mxu1 %v5030_v17  ;;  %v261_v20 = vpack.c.bf16 %v237_v19, %v213_v18  ;;  %v5036_v23 = vld [vmem:[#allocation4 + $0x24] ss:$8 sps:$4 sm:$0xff]   ;;  %v5041_v25 = vld [vmem:[#allocation4 + $0x20] ss:$8 sps:$4 sm:$0xff]   ;;  %v5006_v28 = vld [vmem:[#allocation4 + $0x494] ss:$8 sps:$4 sm:$0xff]  }
  0xdf   :  { %v5003_v24 = vld [vmem:[#allocation4 + $0x484] ss:$8 sps:$4 sm:$0xff]   ;;  %v5005_v27 = vld [vmem:[#allocation4 + $0x480] ss:$8 sps:$4 sm:$0xff]   ;;  %v5047_v29 = vld [vmem:[#allocation4 + $0x30] ss:$8 sps:$4 sm:$0xff]  }
  0xe0   :  { %2769 = vmatpush1.bf16.msra.mxu0 %v4987_v5  ;;  %2796 = vmatprep.mubr.bf16.mxu0 %v261_v20  ;;  %v5048_v30 = vld [vmem:[#allocation4 + $0x44] ss:$8 sps:$4 sm:$0xff]   ;;  %v5008_v31 = vld [vmem:[#allocation4 + $0x490] ss:$8 sps:$4 sm:$0xff]   ;;  %v5053_v33 = vld [vmem:[#allocation4 + $0x40] ss:$8 sps:$4 sm:$0xff]  }
  0xe1   :  { %2770 = vmatprep.subr.bf16.mxu0 %v4988_v6  ;;  %2595 = vmatpush1.bf16.msra.mxu1 %v5035_v21  ;;  %v5009_v32 = vld [vmem:[#allocation4 + $0x4a4] ss:$8 sps:$4 sm:$0xff]   ;;  %v5054_v34 = vld [vmem:[#allocation4 + $0x54] ss:$8 sps:$4 sm:$0xff]   ;;  %v5011_v35 = vld [vmem:[#allocation4 + $0x4a0] ss:$8 sps:$4 sm:$0xff]  }
  0xe2   :  { %2596 = vmatprep.subr.bf16.mxu1 %v5036_v23  ;;  %v5012_v36 = vld [vmem:[#allocation4 + $0x4b4] ss:$8 sps:$4 sm:$0xff]   ;;  %v5059_v37 = vld [vmem:[#allocation4 + $0x50] ss:$8 sps:$4 sm:$0xff]   ;;  %v5060_v38 = vld [vmem:[#allocation4 + $0x64] ss:$8 sps:$4 sm:$0xff]  }
  0xe3   :  { %v5014_v39 = vld [vmem:[#allocation4 + $0x4b0] ss:$8 sps:$4 sm:$0xff]   ;;  %v5015_v40 = vld [vmem:[#allocation4 + $0x4c4] ss:$8 sps:$4 sm:$0xff]   ;;  %v5065_v41 = vld [vmem:[#allocation4 + $0x60] ss:$8 sps:$4 sm:$0xff]  }
  0xe4   :  { %2771 = vmatpush1.bf16.msra.mxu0 %v4990_v7  ;;  %v5066_v42 = vld [vmem:[#allocation4 + $0x74] ss:$8 sps:$4 sm:$0xff]   ;;  %v5017_v43 = vld [vmem:[#allocation4 + $0x4c0] ss:$8 sps:$4 sm:$0xff]   ;;  %v5071_v45 = vld [vmem:[#allocation4 + $0x70] ss:$8 sps:$4 sm:$0xff]  }
  0xe5   :  { %2772 = vmatprep.subr.bf16.mxu0 %v4991_v8  ;;  %2597 = vmatpush1.bf16.msra.mxu1 %v5041_v25  ;;  %v5018_v44 = vld [vmem:[#allocation4 + $0x4d4] ss:$8 sps:$4 sm:$0xff]   ;;  %v5072_v46 = vld [vmem:[#allocation4 + $0x84] ss:$8 sps:$4 sm:$0xff]   ;;  %v5020_v47 = vld [vmem:[#allocation4 + $0x4d0] ss:$8 sps:$4 sm:$0xff]  }
  0xe6   :  { %2598 = vmatprep.subr.bf16.mxu1 %v5042_v26  ;;  %v5021_v48 = vld [vmem:[#allocation4 + $0x4e4] ss:$8 sps:$4 sm:$0xff]   ;;  %v5077_v49 = vld [vmem:[#allocation4 + $0x80] ss:$8 sps:$4 sm:$0xff]   ;;  %v5078_v50 = vld [vmem:[#allocation4 + $0x94] ss:$8 sps:$4 sm:$0xff]  }
  0xe7   :  { %v5023_v51 = vld [vmem:[#allocation4 + $0x4e0] ss:$8 sps:$4 sm:$0xff]   ;;  %v5026_v52 = vld [vmem:[#allocation4 + $0x4f4] ss:$8 sps:$4 sm:$0xff]   ;;  %v5083_v53 = vld [vmem:[#allocation4 + $0x90] ss:$8 sps:$4 sm:$0xff]  }
  0xe8   :  { %2773 = vmatpush1.bf16.msra.mxu0 %v4993_v9  ;;  %v5084_v54 = vld [vmem:[#allocation4 + $0xa4] ss:$8 sps:$4 sm:$0xff]   ;;  %v5029_v55 = vld [vmem:[#allocation4 + $0x4f0] ss:$8 sps:$4 sm:$0xff]   ;;  %v5089_v59 = vld [vmem:[#allocation4 + $0xa0] ss:$8 sps:$4 sm:$0xff]  }
  0xe9   :  { %2774 = vmatprep.subr.bf16.mxu0 %v4994_v10  ;;  %2599 = vmatpush1.bf16.msra.mxu1 %v5047_v29  ;;  %v212_v56 = vld [vmem:[%s6527_s0 + $0x40] sm:$0xff]  ;;  %v5090_v60 = vld [vmem:[#allocation4 + $0xb4] ss:$8 sps:$4 sm:$0xff]   ;;  %v5095_v0 = vld [vmem:[#allocation4 + $0xb0] ss:$8 sps:$4 sm:$0xff]  }
  0xea   :  { %2600 = vmatprep.subr.bf16.mxu1 %v5048_v30  ;;  %v236_v57 = vld [vmem:[%s6527_s0 + $0x100] sm:$0xff]  ;;  %v5040_v63 = vld [vmem:[#allocation4 + $0x514] ss:$8 sps:$4 sm:$0xff]   ;;  %v205_v1 = vld [vmem:[%s6527_s0 + $0x8] sm:$0xff] }
  0xeb   :  { %v5034_v58 = vld [vmem:[#allocation4 + $0x504] ss:$8 sps:$4 sm:$0xff]   ;;  %v260_v61 = vpack.c.bf16 %v236_v57, %v212_v56  ;;  %v5032_v62 = vld [vmem:[#allocation4 + $0x500] ss:$8 sps:$4 sm:$0xff]   ;;  %v5038_v5 = vld [vmem:[#allocation4 + $0x510] ss:$8 sps:$4 sm:$0xff]  }
  0xec   :  { %2775 = vmatpush1.bf16.msra.mxu0 %v4996_v11  ;;  %v229_v2 = vld [vmem:[%s6527_s0 + $0xc8] sm:$0xff]  ;;  %v5102_v8 = vld [vmem:[#allocation4 + $0xd4] ss:$8 sps:$4 sm:$0xff]   ;;  %v5050_v16 = vld [vmem:[#allocation4 + $0x530] ss:$8 sps:$4 sm:$0xff]  }
  0xed   :  { %2776 = vmatprep.subr.bf16.mxu0 %v4997_v12  ;;  %2601 = vmatpush1.bf16.msra.mxu1 %v5053_v33  ;;  %v5096_v3 = vld [vmem:[#allocation4 + $0xc4] ss:$8 sps:$4 sm:$0xff]   ;;  %v253_v4 = vpack.c.bf16 %v229_v2, %v205_v1  ;;  %v5101_v7 = vld [vmem:[#allocation4 + $0xc0] ss:$8 sps:$4 sm:$0xff]   ;;  %v215_v9 = vld [vmem:[%s6527_s0 + $0x58] sm:$0xff] }
  0xee   :  { %2602 = vmatprep.subr.bf16.mxu1 %v5054_v34  ;;  %v5046_v6 = vld [vmem:[#allocation4 + $0x524] ss:$8 sps:$4 sm:$0xff]   ;;  %v239_v10 = vld [vmem:[%s6527_s0 + $0x118] sm:$0xff]  ;;  %v5044_v12 = vld [vmem:[#allocation4 + $0x520] ss:$8 sps:$4 sm:$0xff]  }
  0xef   :  { %2624 = vmatprep.mubr.bf16.mxu1 %v253_v4  ;;  %v263_v11 = vpack.c.bf16 %v239_v10, %v215_v9  ;;  %v5052_v13 = vld [vmem:[#allocation4 + $0x534] ss:$8 sps:$4 sm:$0xff]   ;;  %v5058_v17 = vld [vmem:[#allocation4 + $0x544] ss:$8 sps:$4 sm:$0xff]   ;;  %v5113_v18 = vld [vmem:[#allocation4 + $0xe0] ss:$8 sps:$4 sm:$0xff]  }
  0xf0   :  { %2777 = vmatpush1.bf16.msra.mxu0 %v4999_v14  ;;  %v5107_v14 = vld [vmem:[#allocation4 + $0xd0] ss:$8 sps:$4 sm:$0xff]   ;;  %v5114_v19 = vld [vmem:[#allocation4 + $0xf4] ss:$8 sps:$4 sm:$0xff]   ;;  %v5056_v20 = vld [vmem:[#allocation4 + $0x540] ss:$8 sps:$4 sm:$0xff]  }
  0xf1   :  { %2778 = vmatprep.subr.bf16.mxu0 %v5000_v15  ;;  %2603 = vmatpush1.bf16.msra.mxu1 %v5059_v37  ;;  %v5108_v15 = vld [vmem:[#allocation4 + $0xe4] ss:$8 sps:$4 sm:$0xff]   ;;  %v5064_v21 = vld [vmem:[#allocation4 + $0x554] ss:$8 sps:$4 sm:$0xff]   ;;  %v5062_v26 = vld [vmem:[#allocation4 + $0x550] ss:$8 sps:$4 sm:$0xff]  }
  0xf2   :  { %2604 = vmatprep.subr.bf16.mxu1 %v5060_v38  ;;  %v204_v23 = vld [vmem:[%s6527_s0] sm:$0xff]  ;;  %v5128_v30 = vld [vmem:[#allocation4 + $0x114] ss:$8 sps:$4 sm:$0xff]   ;;  %v5126_v33 = vld [vmem:[#allocation4 + $0x110] ss:$8 sps:$4 sm:$0xff]  }
  0xf3   :  { %v5122_v25 = vld [vmem:[#allocation4 + $0x104] ss:$8 sps:$4 sm:$0xff]   ;;  %v5120_v29 = vld [vmem:[#allocation4 + $0x100] ss:$8 sps:$4 sm:$0xff]   ;;  %v5140_v38 = vld [vmem:[#allocation4 + $0x134] ss:$8 sps:$4 sm:$0xff]  }
  0xf4   :  { %2779 = vmatpush1.bf16.msra.mxu0 %v5002_v22  ;;  %v5119_v22 = vld [vmem:[#allocation4 + $0xf0] ss:$8 sps:$4 sm:$0xff]   ;;  %v5134_v34 = vld [vmem:[#allocation4 + $0x124] ss:$8 sps:$4 sm:$0xff]   ;;  %v5132_v37 = vld [vmem:[#allocation4 + $0x120] ss:$8 sps:$4 sm:$0xff]  }
  0xf5   :  { %2780 = vmatprep.subr.bf16.mxu0 %v5003_v24  ;;  %2605 = vmatpush1.bf16.msra.mxu1 %v5065_v41  ;;  %v228_v24 = vld [vmem:[%s6527_s0 + $0xc0] sm:$0xff]  ;;  %v5138_v41 = vld [vmem:[#allocation4 + $0x130] ss:$8 sps:$4 sm:$0xff]   ;;  %v5176_v1 = vld [vmem:[#allocation4 + $0x194] ss:$8 sps:$4 sm:$0xff]  }
  0xf6   :  { %2606 = vmatprep.subr.bf16.mxu1 %v5066_v42  ;;  %v5146_v42 = vld [vmem:[#allocation4 + $0x144] ss:$8 sps:$4 sm:$0xff]   ;;  %v231_v56 = vld [vmem:[%s6527_s0 + $0xd8] sm:$0xff]  ;;  %v5116_v2 = vld [vmem:[#allocation4 + $0x5e0] ss:$8 sps:$4 sm:$0xff]  }
  0xf7   :  { %v5174_v4 = vld [vmem:[#allocation4 + $0x190] ss:$8 sps:$4 sm:$0xff]   ;;  %v5180_v10 = vld [vmem:[#allocation4 + $0x1a0] ss:$8 sps:$4 sm:$0xff]  }
  0xf8   :  { %2781 = vmatpush1.bf16.msra.mxu0 %v5005_v27  ;;  %v5070_v27 = vld [vmem:[#allocation4 + $0x564] ss:$8 sps:$4 sm:$0xff]   ;;  %v238_v9 = vld [vmem:[%s6527_s0 + $0x110] sm:$0xff] }
  0xf9   :  { %2782 = vmatprep.subr.bf16.mxu0 %v5006_v28  ;;  %2607 = vmatpush1.bf16.msra.mxu1 %v5071_v45  ;;  %v252_v28 = vpack.c.bf16 %v228_v24, %v204_v23  ;;  %v5144_v45 = vld [vmem:[#allocation4 + $0x140] ss:$8 sps:$4 sm:$0xff]   ;;  %v5200_v23 = vld [vmem:[#allocation4 + $0x1d4] ss:$8 sps:$4 sm:$0xff]  }
  0xfa   :  { %2608 = vmatprep.subr.bf16.mxu1 %v5072_v46  ;;  %v5152_v46 = vld [vmem:[#allocation4 + $0x154] ss:$8 sps:$4 sm:$0xff]   ;;  %v5141_v24 = vld [vmem:[#allocation4 + $0x620] ss:$8 sps:$4 sm:$0xff]  }
  0xfc   :  { %2783 = vmatpush1.bf16.msra.mxu0 %v5008_v31  ;;  %v5068_v31 = vld [vmem:[#allocation4 + $0x560] ss:$8 sps:$4 sm:$0xff]  }
  0xfd   :  { %2784 = vmatprep.subr.bf16.mxu0 %v5009_v32  ;;  %2609 = vmatpush1.bf16.msra.mxu1 %v5077_v49  ;;  %v5076_v32 = vld [vmem:[#allocation4 + $0x574] ss:$8 sps:$4 sm:$0xff]   ;;  %v5150_v49 = vld [vmem:[#allocation4 + $0x150] ss:$8 sps:$4 sm:$0xff]  }
  0xfe   :  { %2610 = vmatprep.subr.bf16.mxu1 %v5078_v50  ;;  %v5158_v50 = vld [vmem:[#allocation4 + $0x164] ss:$8 sps:$4 sm:$0xff]  }
 0x100   :  { %2785 = vmatpush1.bf16.msra.mxu0 %v5011_v35  ;;  %v5074_v35 = vld [vmem:[#allocation4 + $0x570] ss:$8 sps:$4 sm:$0xff]  }
 0x101   :  { %2786 = vmatprep.subr.bf16.mxu0 %v5012_v36  ;;  %2611 = vmatpush1.bf16.msra.mxu1 %v5083_v53  ;;  %v5082_v36 = vld [vmem:[#allocation4 + $0x584] ss:$8 sps:$4 sm:$0xff]   ;;  %v5156_v53 = vld [vmem:[#allocation4 + $0x160] ss:$8 sps:$4 sm:$0xff]  }
 0x102   :  { %2612 = vmatprep.subr.bf16.mxu1 %v5084_v54  ;;  %v5164_v54 = vld [vmem:[#allocation4 + $0x174] ss:$8 sps:$4 sm:$0xff]  }
 0x104   :  { %2787 = vmatpush1.bf16.msra.mxu0 %v5014_v39  ;;  %v5080_v39 = vld [vmem:[#allocation4 + $0x580] ss:$8 sps:$4 sm:$0xff]  }
 0x105   :  { %2788 = vmatprep.subr.bf16.mxu0 %v5015_v40  ;;  %2613 = vmatpush1.bf16.msra.mxu1 %v5089_v59  ;;  %v5088_v40 = vld [vmem:[#allocation4 + $0x594] ss:$8 sps:$4 sm:$0xff]  }
 0x106   :  { %2614 = vmatprep.subr.bf16.mxu1 %v5090_v60  ;;  %v5112_v59 = vld [vmem:[#allocation4 + $0x5d4] ss:$8 sps:$4 sm:$0xff]   ;;  %v5162_v60 = vld [vmem:[#allocation4 + $0x170] ss:$8 sps:$4 sm:$0xff]  }
 0x108   :  { %2789 = vmatpush1.bf16.msra.mxu0 %v5017_v43  ;;  %v5086_v43 = vld [vmem:[#allocation4 + $0x590] ss:$8 sps:$4 sm:$0xff]  }
 0x109   :  { %2790 = vmatprep.subr.bf16.mxu0 %v5018_v44  ;;  %2615 = vmatpush1.bf16.msra.mxu1 %v5095_v0  ;;  %v5094_v44 = vld [vmem:[#allocation4 + $0x5a4] ss:$8 sps:$4 sm:$0xff]   ;;  %v5168_v0 = vld [vmem:[#allocation4 + $0x180] ss:$8 sps:$4 sm:$0xff]  }
 0x10a   :  { %2616 = vmatprep.subr.bf16.mxu1 %v5096_v3  ;;  %v5125_v3 = vld [vmem:[#allocation4 + $0x5f4] ss:$8 sps:$4 sm:$0xff]  }
 0x10c   :  { %2791 = vmatpush1.bf16.msra.mxu0 %v5020_v47  ;;  %v5092_v47 = vld [vmem:[#allocation4 + $0x5a0] ss:$8 sps:$4 sm:$0xff]  }
 0x10d   :  { %2792 = vmatprep.subr.bf16.mxu0 %v5021_v48  ;;  %2617 = vmatpush1.bf16.msra.mxu1 %v5101_v7  ;;  %v5100_v48 = vld [vmem:[#allocation4 + $0x5b4] ss:$8 sps:$4 sm:$0xff]   ;;  %v5131_v7 = vld [vmem:[#allocation4 + $0x604] ss:$8 sps:$4 sm:$0xff]  }
 0x10e   :  { %2618 = vmatprep.subr.bf16.mxu1 %v5102_v8  ;;  %v214_v8 = vld [vmem:[%s6527_s0 + $0x50] sm:$0xff] }
 0x110   :  { %2793 = vmatpush1.bf16.msra.mxu0 %v5023_v51  ;;  %v5098_v51 = vld [vmem:[#allocation4 + $0x5b0] ss:$8 sps:$4 sm:$0xff]  }
 0x111   :  { %2794 = vmatprep.subr.bf16.mxu0 %v5026_v52  ;;  %2619 = vmatpush1.bf16.msra.mxu1 %v5107_v14  ;;  %v5106_v52 = vld [vmem:[#allocation4 + $0x5c4] ss:$8 sps:$4 sm:$0xff]   ;;  %v262_v14 = vpack.c.bf16 %v238_v9, %v214_v8  ;;  %v5258_v8 = vld [vmem:[#allocation4 + $0x270] ss:$8 sps:$4 sm:$0xff]  }
 0x112   :  { %2620 = vmatprep.subr.bf16.mxu1 %v5108_v15  ;;  %v5129_v15 = vld [vmem:[#allocation4 + $0x600] ss:$8 sps:$4 sm:$0xff]   ;;  %v5266_v9 = vld [vmem:[#allocation4 + $0x284] ss:$8 sps:$4 sm:$0xff]  }
 0x114   :  { %2795 = vmatpush1.bf16.msra.mxu0 %v5029_v55  ;;  %v207_v55 = vld [vmem:[%s6527_s0 + $0x18] sm:$0xff] }
 0x115   :  { %2807 = vmatprep.subr.bf16.mxu0 %v5034_v58  ;;  %2621 = vmatpush1.bf16.msra.mxu1 %v5113_v18  ;;  %v255_v57 = vpack.c.bf16 %v231_v56, %v207_v55  ;;  %v5104_v58 = vld [vmem:[#allocation4 + $0x5c0] ss:$8 sps:$4 sm:$0xff]   ;;  %v5186_v18 = vld [vmem:[#allocation4 + $0x1b0] ss:$8 sps:$4 sm:$0xff]   ;;  %v5185_v55 = vld [vmem:[#allocation4 + $0x694] ss:$8 sps:$4 sm:$0xff]  }
 0x116   :  { %2622 = vmatprep.subr.bf16.mxu1 %v5114_v19  ;;  %v5194_v19 = vld [vmem:[#allocation4 + $0x1c4] ss:$8 sps:$4 sm:$0xff]   ;;  %v5234_v56 = vld [vmem:[#allocation4 + $0x230] ss:$8 sps:$4 sm:$0xff]  }
 0x117   :  { %2797 = vmatmul.mubr.bf16.vlgmr.msra.gmra.mrb[0].mxu0 %v260_v61  ;;  %v5170_v61 = vld [vmem:[#allocation4 + $0x184] ss:$8 sps:$4 sm:$0xff]  }
 0x118   :  { %2808 = vmatpush1.bf16.msra.mxu0 %v5032_v62  ;;  %2839 = vmatprep.mubr.bf16.mxu0 %v263_v11  ;;  %v5110_v62 = vld [vmem:[#allocation4 + $0x5d0] ss:$8 sps:$4 sm:$0xff]   ;;  %v217_v11 = vld [vmem:[%s6527_s0 + $0x68] sm:$0xff] }
 0x119   :  { %2809 = vmatprep.subr.bf16.mxu0 %v5040_v63  ;;  %2623 = vmatpush1.bf16.msra.mxu1 %v5119_v22  ;;  %v5118_v63 = vld [vmem:[#allocation4 + $0x5e4] ss:$8 sps:$4 sm:$0xff]   ;;  %v5192_v22 = vld [vmem:[#allocation4 + $0x1c0] ss:$8 sps:$4 sm:$0xff]  }
 0x11a   :  { %2635 = vmatprep.subr.bf16.mxu1 %v5122_v25  ;;  %v5149_v25 = vld [vmem:[#allocation4 + $0x634] ss:$8 sps:$4 sm:$0xff]  }
 0x11c   :  { %2810 = vmatpush1.bf16.msra.mxu0 %v5038_v5  ;;  %2625 = vmatmul.mubr.bf16.vlgmr.msra.gmra.mrb[0].mxu1 %v252_v28  ;;  %v5123_v5 = vld [vmem:[#allocation4 + $0x5f0] ss:$8 sps:$4 sm:$0xff]  }
 0x11d   :  { %2811 = vmatprep.subr.bf16.mxu0 %v5046_v6  ;;  %2636 = vmatpush1.bf16.msra.mxu1 %v5120_v29  ;;  %v5182_v6 = vld [vmem:[#allocation4 + $0x1a4] ss:$8 sps:$4 sm:$0xff]   ;;  %v5147_v28 = vld [vmem:[#allocation4 + $0x630] ss:$8 sps:$4 sm:$0xff]  }
 0x11e   :  { %2637 = vmatprep.subr.bf16.mxu1 %v5128_v30  ;;  %2667 = vmatprep.mubr.bf16.mxu1 %v255_v57  ;;  %v5155_v29 = vld [vmem:[#allocation4 + $0x644] ss:$8 sps:$4 sm:$0xff]   ;;  %v5204_v30 = vld [vmem:[#allocation4 + $0x1e0] ss:$8 sps:$4 sm:$0xff]  }
 0x11f   :  { %v5242_v57 = vld [vmem:[#allocation4 + $0x244] ss:$8 sps:$4 sm:$0xff]  }
 0x120   :  { %2812 = vmatpush1.bf16.msra.mxu0 %v5044_v12  ;;  %v241_v12 = vld [vmem:[%s6527_s0 + $0x128] sm:$0xff] }
 0x121   :  { %2813 = vmatprep.subr.bf16.mxu0 %v5052_v13  ;;  %2638 = vmatpush1.bf16.msra.mxu1 %v5126_v33  ;;  %v5188_v13 = vld [vmem:[#allocation4 + $0x1b4] ss:$8 sps:$4 sm:$0xff]  }
 0x122   :  { %2639 = vmatprep.subr.bf16.mxu1 %v5134_v34  ;;  %v5161_v33 = vld [vmem:[#allocation4 + $0x654] ss:$8 sps:$4 sm:$0xff]   ;;  %v5210_v34 = vld [vmem:[#allocation4 + $0x1f0] ss:$8 sps:$4 sm:$0xff]  }
 0x124   :  { %2814 = vmatpush1.bf16.msra.mxu0 %v5050_v16  ;;  %v5137_v16 = vld [vmem:[#allocation4 + $0x614] ss:$8 sps:$4 sm:$0xff]  }
 0x125   :  { %2815 = vmatprep.subr.bf16.mxu0 %v5058_v17  ;;  %2640 = vmatpush1.bf16.msra.mxu1 %v5132_v37  ;;  %v265_v17 = vpack.c.bf16 %v241_v12, %v217_v11  ;;  %v5218_v37 = vld [vmem:[#allocation4 + $0x204] ss:$8 sps:$4 sm:$0xff]   ;;  %v5264_v12 = vld [vmem:[#allocation4 + $0x280] ss:$8 sps:$4 sm:$0xff]  }
 0x126   :  { %2641 = vmatprep.subr.bf16.mxu1 %v5140_v38  ;;  %v5159_v38 = vld [vmem:[#allocation4 + $0x650] ss:$8 sps:$4 sm:$0xff]   ;;  %v5215_v11 = vld [vmem:[#allocation4 + $0x6e4] ss:$8 sps:$4 sm:$0xff]  }
 0x128   :  { %2816 = vmatpush1.bf16.msra.mxu0 %v5056_v20  ;;  %v5135_v20 = vld [vmem:[#allocation4 + $0x610] ss:$8 sps:$4 sm:$0xff]  }
 0x129   :  { %2817 = vmatprep.subr.bf16.mxu0 %v5064_v21  ;;  %2642 = vmatpush1.bf16.msra.mxu1 %v5138_v41  ;;  %v5143_v21 = vld [vmem:[#allocation4 + $0x624] ss:$8 sps:$4 sm:$0xff]   ;;  %v5216_v41 = vld [vmem:[#allocation4 + $0x200] ss:$8 sps:$4 sm:$0xff]  }
 0x12a   :  { %2643 = vmatprep.subr.bf16.mxu1 %v5146_v42  ;;  %v5224_v42 = vld [vmem:[#allocation4 + $0x214] ss:$8 sps:$4 sm:$0xff]  }
 0x12c   :  { %2818 = vmatpush1.bf16.msra.mxu0 %v5062_v26  ;;  %v5198_v26 = vld [vmem:[#allocation4 + $0x1d0] ss:$8 sps:$4 sm:$0xff]  }
 0x12d   :  { %2819 = vmatprep.subr.bf16.mxu0 %v5070_v27  ;;  %2644 = vmatpush1.bf16.msra.mxu1 %v5144_v45  ;;  %v5206_v27 = vld [vmem:[#allocation4 + $0x1e4] ss:$8 sps:$4 sm:$0xff]   ;;  %v5222_v45 = vld [vmem:[#allocation4 + $0x210] ss:$8 sps:$4 sm:$0xff]  }
 0x12e   :  { %2645 = vmatprep.subr.bf16.mxu1 %v5152_v46  ;;  %v5230_v46 = vld [vmem:[#allocation4 + $0x224] ss:$8 sps:$4 sm:$0xff]  }
 0x130   :  { %2820 = vmatpush1.bf16.msra.mxu0 %v5068_v31  ;;  %v5212_v31 = vld [vmem:[#allocation4 + $0x1f4] ss:$8 sps:$4 sm:$0xff]  }
 0x131   :  { %2821 = vmatprep.subr.bf16.mxu0 %v5076_v32  ;;  %2646 = vmatpush1.bf16.msra.mxu1 %v5150_v49  ;;  %v5153_v32 = vld [vmem:[#allocation4 + $0x640] ss:$8 sps:$4 sm:$0xff]  }
 0x132   :  { %2647 = vmatprep.subr.bf16.mxu1 %v5158_v50  ;;  %v233_v49 = vld [vmem:[%s6527_s0 + $0xe8] sm:$0xff] }
 0x133   :  { %v5179_v50 = vld [vmem:[#allocation4 + $0x684] ss:$8 sps:$4 sm:$0xff]  }
 0x134   :  { %2822 = vmatpush1.bf16.msra.mxu0 %v5074_v35  ;;  %v206_v35 = vld [vmem:[%s6527_s0 + $0x10] sm:$0xff] }
 0x135   :  { %2823 = vmatprep.subr.bf16.mxu0 %v5082_v36  ;;  %2648 = vmatpush1.bf16.msra.mxu1 %v5156_v53  ;;  %v230_v36 = vld [vmem:[%s6527_s0 + $0xd0] sm:$0xff] }
 0x136   :  { %2649 = vmatprep.subr.bf16.mxu1 %v5164_v54  ;;  %v5236_v53 = vld [vmem:[#allocation4 + $0x234] ss:$8 sps:$4 sm:$0xff]   ;;  %v5177_v54 = vld [vmem:[#allocation4 + $0x680] ss:$8 sps:$4 sm:$0xff]  }
 0x138   :  { %2824 = vmatpush1.bf16.msra.mxu0 %v5080_v39  ;;  %v5167_v39 = vld [vmem:[#allocation4 + $0x664] ss:$8 sps:$4 sm:$0xff]  }
 0x139   :  { %2825 = vmatprep.subr.bf16.mxu0 %v5088_v40  ;;  %2650 = vmatpush1.bf16.msra.mxu1 %v5162_v60  ;;  %v254_v40 = vpack.c.bf16 %v230_v36, %v206_v35  ;;  %v5240_v60 = vld [vmem:[#allocation4 + $0x240] ss:$8 sps:$4 sm:$0xff]   ;;  %v5296_v35 = vld [vmem:[#allocation4 + $0x2d4] ss:$8 sps:$4 sm:$0xff]  }
 0x13a   :  { %2651 = vmatprep.subr.bf16.mxu1 %v5170_v61  ;;  %v5248_v61 = vld [vmem:[#allocation4 + $0x254] ss:$8 sps:$4 sm:$0xff]   ;;  %v5237_v36 = vld [vmem:[#allocation4 + $0x720] ss:$8 sps:$4 sm:$0xff]  }
 0x13c   :  { %2826 = vmatpush1.bf16.msra.mxu0 %v5086_v43  ;;  %v5165_v43 = vld [vmem:[#allocation4 + $0x660] ss:$8 sps:$4 sm:$0xff]  }
 0x13d   :  { %2827 = vmatprep.subr.bf16.mxu0 %v5094_v44  ;;  %2652 = vmatpush1.bf16.msra.mxu1 %v5168_v0  ;;  %v5173_v44 = vld [vmem:[#allocation4 + $0x674] ss:$8 sps:$4 sm:$0xff]   ;;  %v5246_v0 = vld [vmem:[#allocation4 + $0x250] ss:$8 sps:$4 sm:$0xff]  }
 0x13e   :  { %2653 = vmatprep.subr.bf16.mxu1 %v5176_v1  ;;  %v5254_v1 = vld [vmem:[#allocation4 + $0x264] ss:$8 sps:$4 sm:$0xff]  }
 0x140   :  { %2828 = vmatpush1.bf16.msra.mxu0 %v5092_v47  ;;  %v5171_v47 = vld [vmem:[#allocation4 + $0x670] ss:$8 sps:$4 sm:$0xff]  }
 0x141   :  { %2829 = vmatprep.subr.bf16.mxu0 %v5100_v48  ;;  %2654 = vmatpush1.bf16.msra.mxu1 %v5174_v4  ;;  %v209_v48 = vld [vmem:[%s6527_s0 + $0x28] sm:$0xff] }
 0x142   :  { %2655 = vmatprep.subr.bf16.mxu1 %v5182_v6  ;;  %v5252_v4 = vld [vmem:[#allocation4 + $0x260] ss:$8 sps:$4 sm:$0xff]  }
 0x143   :  { %v5201_v6 = vld [vmem:[#allocation4 + $0x6c0] ss:$8 sps:$4 sm:$0xff]  }
 0x144   :  { %2830 = vmatpush1.bf16.msra.mxu0 %v5098_v51  ;;  %v5228_v51 = vld [vmem:[#allocation4 + $0x220] ss:$8 sps:$4 sm:$0xff]  }
 0x145   :  { %2831 = vmatprep.subr.bf16.mxu0 %v5106_v52  ;;  %2656 = vmatpush1.bf16.msra.mxu1 %v5180_v10  ;;  %v257_v52 = vpack.c.bf16 %v233_v49, %v209_v48  ;;  %v5207_v10 = vld [vmem:[#allocation4 + $0x6d0] ss:$8 sps:$4 sm:$0xff]   ;;  %v232_v48 = vld [vmem:[%s6527_s0 + $0xe0] sm:$0xff] }
 0x146   :  { %2657 = vmatprep.subr.bf16.mxu1 %v5188_v13  ;;  %v5272_v13 = vld [vmem:[#allocation4 + $0x294] ss:$8 sps:$4 sm:$0xff]   ;;  %v5255_v49 = vld [vmem:[#allocation4 + $0x750] ss:$8 sps:$4 sm:$0xff]  }
 0x148   :  { %2832 = vmatpush1.bf16.msra.mxu0 %v5104_v58  ;;  %v5183_v58 = vld [vmem:[#allocation4 + $0x690] ss:$8 sps:$4 sm:$0xff]  }
 0x149   :  { %2833 = vmatprep.subr.bf16.mxu0 %v5112_v59  ;;  %2658 = vmatpush1.bf16.msra.mxu1 %v5186_v18  ;;  %v5191_v59 = vld [vmem:[#allocation4 + $0x6a4] ss:$8 sps:$4 sm:$0xff]  }
 0x14a   :  { %2659 = vmatprep.subr.bf16.mxu1 %v5194_v19  ;;  %v5278_v18 = vld [vmem:[#allocation4 + $0x2a4] ss:$8 sps:$4 sm:$0xff]  }
 0x14b   :  { %v5227_v19 = vld [vmem:[#allocation4 + $0x704] ss:$8 sps:$4 sm:$0xff]  }
 0x14c   :  { %2834 = vmatpush1.bf16.msra.mxu0 %v5110_v62  ;;  %v5189_v62 = vld [vmem:[#allocation4 + $0x6a0] ss:$8 sps:$4 sm:$0xff]  }
 0x14d   :  { %2835 = vmatprep.subr.bf16.mxu0 %v5118_v63  ;;  %2660 = vmatpush1.bf16.msra.mxu1 %v5192_v22  ;;  %v5197_v63 = vld [vmem:[#allocation4 + $0x6b4] ss:$8 sps:$4 sm:$0xff]   ;;  %v5276_v22 = vld [vmem:[#allocation4 + $0x2a0] ss:$8 sps:$4 sm:$0xff]  }
 0x14e   :  { %2661 = vmatprep.subr.bf16.mxu1 %v5200_v23  ;;  %v219_v23 = vld [vmem:[%s6527_s0 + $0x78] sm:$0xff] }
 0x150   :  { %2836 = vmatpush1.bf16.msra.mxu0 %v5116_v2  ;;  %v5195_v2 = vld [vmem:[#allocation4 + $0x6b0] ss:$8 sps:$4 sm:$0xff]  }
 0x151   :  { %2837 = vmatprep.subr.bf16.mxu0 %v5125_v3  ;;  %2662 = vmatpush1.bf16.msra.mxu1 %v5198_v26  ;;  %v5203_v3 = vld [vmem:[#allocation4 + $0x6c4] ss:$8 sps:$4 sm:$0xff]  }
 0x152   :  { %2663 = vmatprep.subr.bf16.mxu1 %v5206_v27  ;;  %v5225_v27 = vld [vmem:[#allocation4 + $0x700] ss:$8 sps:$4 sm:$0xff]  }
 0x154   :  { %2838 = vmatpush1.bf16.msra.mxu0 %v5123_v5  ;;  %v5260_v5 = vld [vmem:[#allocation4 + $0x274] ss:$8 sps:$4 sm:$0xff]  }
 0x155   :  { %2850 = vmatprep.subr.bf16.mxu0 %v5131_v7  ;;  %2664 = vmatpush1.bf16.msra.mxu1 %v5204_v30  ;;  %v5209_v7 = vld [vmem:[#allocation4 + $0x6d4] ss:$8 sps:$4 sm:$0xff]   ;;  %v5282_v30 = vld [vmem:[#allocation4 + $0x2b0] ss:$8 sps:$4 sm:$0xff]  }
 0x156   :  { %2665 = vmatprep.subr.bf16.mxu1 %v5212_v31  ;;  %v5290_v31 = vld [vmem:[#allocation4 + $0x2c4] ss:$8 sps:$4 sm:$0xff]  }
 0x157   :  { %2840 = vmatmul.mubr.bf16.vlgmr.msra.gmra.mrb[0].mxu0 %v262_v14  ;;  %v5213_v14 = vld [vmem:[#allocation4 + $0x6e0] ss:$8 sps:$4 sm:$0xff]  }
 0x158   :  { %2851 = vmatpush1.bf16.msra.mxu0 %v5129_v15  ;;  %2882 = vmatprep.mubr.bf16.mxu0 %v265_v17  ;;  %v5221_v15 = vld [vmem:[#allocation4 + $0x6f4] ss:$8 sps:$4 sm:$0xff]   ;;  %v5219_v17 = vld [vmem:[#allocation4 + $0x6f0] ss:$8 sps:$4 sm:$0xff]  }
 0x159   :  { %2852 = vmatprep.subr.bf16.mxu0 %v5137_v16  ;;  %2666 = vmatpush1.bf16.msra.mxu1 %v5210_v34  ;;  %v5270_v16 = vld [vmem:[#allocation4 + $0x290] ss:$8 sps:$4 sm:$0xff]   ;;  %v5288_v34 = vld [vmem:[#allocation4 + $0x2c0] ss:$8 sps:$4 sm:$0xff]  }
 0x15a   :  { %2678 = vmatprep.subr.bf16.mxu1 %v5218_v37  ;;  %v5245_v37 = vld [vmem:[#allocation4 + $0x734] ss:$8 sps:$4 sm:$0xff]  }
 0x15c   :  { %2853 = vmatpush1.bf16.msra.mxu0 %v5135_v20  ;;  %2668 = vmatmul.mubr.bf16.vlgmr.msra.gmra.mrb[0].mxu1 %v254_v40  ;;  %v216_v20 = vld [vmem:[%s6527_s0 + $0x60] sm:$0xff]  ;;  %v5243_v40 = vld [vmem:[#allocation4 + $0x730] ss:$8 sps:$4 sm:$0xff]  }
 0x15d   :  { %2854 = vmatprep.subr.bf16.mxu0 %v5143_v21  ;;  %2679 = vmatpush1.bf16.msra.mxu1 %v5216_v41  ;;  %v240_v21 = vld [vmem:[%s6527_s0 + $0x120] sm:$0xff] }
 0x15e   :  { %2680 = vmatprep.subr.bf16.mxu1 %v5224_v42  ;;  %2710 = vmatprep.mubr.bf16.mxu1 %v257_v52  ;;  %v264_v26 = vpack.c.bf16 %v240_v21, %v216_v20  ;;  %v5251_v41 = vld [vmem:[#allocation4 + $0x744] ss:$8 sps:$4 sm:$0xff]   ;;  %v5300_v42 = vld [vmem:[#allocation4 + $0x2e0] ss:$8 sps:$4 sm:$0xff]   ;;  %v211_v52 = vld [vmem:[%s6527_s0 + $0x38] sm:$0xff] }
 0x15f   :  { %v5354_v20 = vld [vmem:[#allocation4 + $0x370] ss:$8 sps:$4 sm:$0xff]   ;;  %v5362_v21 = vld [vmem:[#allocation4 + $0x384] ss:$8 sps:$4 sm:$0xff]  }
 0x160   :  { %2855 = vmatpush1.bf16.msra.mxu0 %v5141_v24  ;;  %v243_v24 = vld [vmem:[%s6527_s0 + $0x138] sm:$0xff] }
 0x161   :  { %2856 = vmatprep.subr.bf16.mxu0 %v5149_v25  ;;  %2681 = vmatpush1.bf16.msra.mxu1 %v5222_v45  ;;  %v5284_v25 = vld [vmem:[#allocation4 + $0x2b4] ss:$8 sps:$4 sm:$0xff]  }
 0x162   :  { %2682 = vmatprep.subr.bf16.mxu1 %v5230_v46  ;;  %v5257_v45 = vld [vmem:[#allocation4 + $0x754] ss:$8 sps:$4 sm:$0xff]   ;;  %v5306_v46 = vld [vmem:[#allocation4 + $0x2f0] ss:$8 sps:$4 sm:$0xff]  }
 0x164   :  { %2857 = vmatpush1.bf16.msra.mxu0 %v5147_v28  ;;  %v5233_v28 = vld [vmem:[#allocation4 + $0x714] ss:$8 sps:$4 sm:$0xff]  }
 0x165   :  { %2858 = vmatprep.subr.bf16.mxu0 %v5155_v29  ;;  %2683 = vmatpush1.bf16.msra.mxu1 %v5228_v51  ;;  %v267_v29 = vpack.c.bf16 %v243_v24, %v219_v23  ;;  %v5263_v51 = vld [vmem:[#allocation4 + $0x764] ss:$8 sps:$4 sm:$0xff]   ;;  %v5360_v24 = vld [vmem:[#allocation4 + $0x380] ss:$8 sps:$4 sm:$0xff]  }
 0x166   :  { %2684 = vmatprep.subr.bf16.mxu1 %v5236_v53  ;;  %v235_v53 = vld [vmem:[%s6527_s0 + $0xf8] sm:$0xff]  ;;  %v5311_v23 = vld [vmem:[#allocation4 + $0x7e4] ss:$8 sps:$4 sm:$0xff]  }
 0x168   :  { %2859 = vmatpush1.bf16.msra.mxu0 %v5153_v32  ;;  %v5231_v32 = vld [vmem:[#allocation4 + $0x710] ss:$8 sps:$4 sm:$0xff]  }
 0x169   :  { %2860 = vmatprep.subr.bf16.mxu0 %v5161_v33  ;;  %2685 = vmatpush1.bf16.msra.mxu1 %v5234_v56  ;;  %v5239_v33 = vld [vmem:[#allocation4 + $0x724] ss:$8 sps:$4 sm:$0xff]   ;;  %v5320_v56 = vld [vmem:[#allocation4 + $0x314] ss:$8 sps:$4 sm:$0xff]  }
 0x16a   :  { %2686 = vmatprep.subr.bf16.mxu1 %v5242_v57  ;;  %v5261_v57 = vld [vmem:[#allocation4 + $0x760] ss:$8 sps:$4 sm:$0xff]  }
 0x16c   :  { %2861 = vmatpush1.bf16.msra.mxu0 %v5159_v38  ;;  %v5294_v38 = vld [vmem:[#allocation4 + $0x2d0] ss:$8 sps:$4 sm:$0xff]  }
 0x16d   :  { %2862 = vmatprep.subr.bf16.mxu0 %v5167_v39  ;;  %2687 = vmatpush1.bf16.msra.mxu1 %v5240_v60  ;;  %v5302_v39 = vld [vmem:[#allocation4 + $0x2e4] ss:$8 sps:$4 sm:$0xff]   ;;  %v5318_v60 = vld [vmem:[#allocation4 + $0x310] ss:$8 sps:$4 sm:$0xff]  }
 0x16e   :  { %2688 = vmatprep.subr.bf16.mxu1 %v5248_v61  ;;  %v5326_v61 = vld [vmem:[#allocation4 + $0x324] ss:$8 sps:$4 sm:$0xff]  }
 0x170   :  { %2863 = vmatpush1.bf16.msra.mxu0 %v5165_v43  ;;  %v5308_v43 = vld [vmem:[#allocation4 + $0x2f4] ss:$8 sps:$4 sm:$0xff]  }
 0x171   :  { %2864 = vmatprep.subr.bf16.mxu0 %v5173_v44  ;;  %2689 = vmatpush1.bf16.msra.mxu1 %v5246_v0  ;;  %v5249_v44 = vld [vmem:[#allocation4 + $0x740] ss:$8 sps:$4 sm:$0xff]  }
 0x172   :  { %2690 = vmatprep.subr.bf16.mxu1 %v5254_v1  ;;  %v5324_v0 = vld [vmem:[#allocation4 + $0x320] ss:$8 sps:$4 sm:$0xff]   ;;  %v5332_v1 = vld [vmem:[#allocation4 + $0x334] ss:$8 sps:$4 sm:$0xff]  }
 0x174   :  { %2865 = vmatpush1.bf16.msra.mxu0 %v5171_v47  ;;  %v208_v47 = vld [vmem:[%s6527_s0 + $0x20] sm:$0xff] }
 0x175   :  { %2866 = vmatprep.subr.bf16.mxu0 %v5179_v50  ;;  %2691 = vmatpush1.bf16.msra.mxu1 %v5252_v4  ;;  %v5314_v50 = vld [vmem:[#allocation4 + $0x304] ss:$8 sps:$4 sm:$0xff]   ;;  %v5330_v4 = vld [vmem:[#allocation4 + $0x330] ss:$8 sps:$4 sm:$0xff]  }
 0x176   :  { %2692 = vmatprep.subr.bf16.mxu1 %v5260_v5  ;;  %v5338_v5 = vld [vmem:[#allocation4 + $0x344] ss:$8 sps:$4 sm:$0xff]  }
 0x178   :  { %2867 = vmatpush1.bf16.msra.mxu0 %v5177_v54  ;;  %v5312_v54 = vld [vmem:[#allocation4 + $0x300] ss:$8 sps:$4 sm:$0xff]  }
 0x179   :  { %2868 = vmatprep.subr.bf16.mxu0 %v5185_v55  ;;  %2693 = vmatpush1.bf16.msra.mxu1 %v5258_v8  ;;  %v256_v55 = vpack.c.bf16 %v232_v48, %v208_v47  ;;  %v5336_v8 = vld [vmem:[#allocation4 + $0x340] ss:$8 sps:$4 sm:$0xff]   ;;  %v5392_v47 = vld [vmem:[#allocation4 + $0x3d4] ss:$8 sps:$4 sm:$0xff]  }
 0x17a   :  { %2694 = vmatprep.subr.bf16.mxu1 %v5266_v9  ;;  %v5344_v9 = vld [vmem:[#allocation4 + $0x354] ss:$8 sps:$4 sm:$0xff]   ;;  %v5333_v48 = vld [vmem:[#allocation4 + $0x820] ss:$8 sps:$4 sm:$0xff]  }
 0x17c   :  { %2869 = vmatpush1.bf16.msra.mxu0 %v5183_v58  ;;  %v259_v58 = vpack.c.bf16 %v235_v53, %v211_v52  ;;  %v5339_v52 = vld [vmem:[#allocation4 + $0x830] ss:$8 sps:$4 sm:$0xff]   ;;  %v5347_v53 = vld [vmem:[#allocation4 + $0x844] ss:$8 sps:$4 sm:$0xff]  }
 0x17d   :  { %2870 = vmatprep.subr.bf16.mxu0 %v5191_v59  ;;  %2695 = vmatpush1.bf16.msra.mxu1 %v5264_v12  ;;  %v5269_v59 = vld [vmem:[#allocation4 + $0x774] ss:$8 sps:$4 sm:$0xff]   ;;  %v5342_v12 = vld [vmem:[#allocation4 + $0x350] ss:$8 sps:$4 sm:$0xff]  }
 0x17e   :  { %2696 = vmatprep.subr.bf16.mxu1 %v5272_v13  ;;  %v5350_v13 = vld [vmem:[#allocation4 + $0x364] ss:$8 sps:$4 sm:$0xff]  }
 0x180   :  { %2871 = vmatpush1.bf16.msra.mxu0 %v5189_v62  ;;  %v5267_v62 = vld [vmem:[#allocation4 + $0x770] ss:$8 sps:$4 sm:$0xff]  }
 0x181   :  { %2872 = vmatprep.subr.bf16.mxu0 %v5197_v63  ;;  %2697 = vmatpush1.bf16.msra.mxu1 %v5270_v16  ;;  %v5275_v63 = vld [vmem:[#allocation4 + $0x784] ss:$8 sps:$4 sm:$0xff]   ;;  %v5348_v16 = vld [vmem:[#allocation4 + $0x360] ss:$8 sps:$4 sm:$0xff]  }
 0x182   :  { %2698 = vmatprep.subr.bf16.mxu1 %v5278_v18  ;;  %v5297_v18 = vld [vmem:[#allocation4 + $0x7c0] ss:$8 sps:$4 sm:$0xff]  }
 0x184   :  { %2873 = vmatpush1.bf16.msra.mxu0 %v5195_v2  ;;  %v5273_v2 = vld [vmem:[#allocation4 + $0x780] ss:$8 sps:$4 sm:$0xff]  }
 0x185   :  { %2874 = vmatprep.subr.bf16.mxu0 %v5203_v3  ;;  %2699 = vmatpush1.bf16.msra.mxu1 %v5276_v22  ;;  %v5281_v3 = vld [vmem:[#allocation4 + $0x794] ss:$8 sps:$4 sm:$0xff]   ;;  %v5303_v22 = vld [vmem:[#allocation4 + $0x7d0] ss:$8 sps:$4 sm:$0xff]  }
 0x186   :  { %2700 = vmatprep.subr.bf16.mxu1 %v5284_v25  ;;  %v5368_v25 = vld [vmem:[#allocation4 + $0x394] ss:$8 sps:$4 sm:$0xff]  }
 0x188   :  { %2875 = vmatpush1.bf16.msra.mxu0 %v5201_v6  ;;  %v5279_v6 = vld [vmem:[#allocation4 + $0x790] ss:$8 sps:$4 sm:$0xff]  }
 0x189   :  { %2876 = vmatprep.subr.bf16.mxu0 %v5209_v7  ;;  %2701 = vmatpush1.bf16.msra.mxu1 %v5282_v30  ;;  %v5287_v7 = vld [vmem:[#allocation4 + $0x7a4] ss:$8 sps:$4 sm:$0xff]   ;;  %v5315_v30 = vld [vmem:[#allocation4 + $0x7f0] ss:$8 sps:$4 sm:$0xff]  }
 0x18a   :  { %2702 = vmatprep.subr.bf16.mxu1 %v5290_v31  ;;  %v218_v31 = vld [vmem:[%s6527_s0 + $0x70] sm:$0xff] }
 0x18c   :  { %2877 = vmatpush1.bf16.msra.mxu0 %v5207_v10  ;;  %v5285_v10 = vld [vmem:[#allocation4 + $0x7a0] ss:$8 sps:$4 sm:$0xff]  }
 0x18d   :  { %2878 = vmatprep.subr.bf16.mxu0 %v5215_v11  ;;  %2703 = vmatpush1.bf16.msra.mxu1 %v5288_v34  ;;  %v5293_v11 = vld [vmem:[#allocation4 + $0x7b4] ss:$8 sps:$4 sm:$0xff]   ;;  %v5372_v34 = vld [vmem:[#allocation4 + $0x3a0] ss:$8 sps:$4 sm:$0xff]  }
 0x18e   :  { %2704 = vmatprep.subr.bf16.mxu1 %v5296_v35  ;;  %v5380_v35 = vld [vmem:[#allocation4 + $0x3b4] ss:$8 sps:$4 sm:$0xff]  }
 0x190   :  { %2879 = vmatpush1.bf16.msra.mxu0 %v5213_v14  ;;  %v5291_v14 = vld [vmem:[#allocation4 + $0x7b0] ss:$8 sps:$4 sm:$0xff]  }
 0x191   :  { %2880 = vmatprep.subr.bf16.mxu0 %v5221_v15  ;;  %2705 = vmatpush1.bf16.msra.mxu1 %v5294_v38  ;;  %v5299_v15 = vld [vmem:[#allocation4 + $0x7c4] ss:$8 sps:$4 sm:$0xff]  }
 0x192   :  { %2706 = vmatprep.subr.bf16.mxu1 %v5302_v39  ;;  %v5321_v39 = vld [vmem:[#allocation4 + $0x800] ss:$8 sps:$4 sm:$0xff]  }
 0x194   :  { %2881 = vmatpush1.bf16.msra.mxu0 %v5219_v17  ;;  %v5356_v17 = vld [vmem:[#allocation4 + $0x374] ss:$8 sps:$4 sm:$0xff]  }
 0x195   :  { %2893 = vmatprep.subr.bf16.mxu0 %v5227_v19  ;;  %2707 = vmatpush1.bf16.msra.mxu1 %v5300_v42  ;;  %v5305_v19 = vld [vmem:[#allocation4 + $0x7d4] ss:$8 sps:$4 sm:$0xff]   ;;  %v5378_v42 = vld [vmem:[#allocation4 + $0x3b0] ss:$8 sps:$4 sm:$0xff]  }
 0x196   :  { %2708 = vmatprep.subr.bf16.mxu1 %v5308_v43  ;;  %v5386_v43 = vld [vmem:[#allocation4 + $0x3c4] ss:$8 sps:$4 sm:$0xff]  }
 0x197   :  { %2883 = vmatmul.mubr.bf16.vlgmr.msra.gmra.mrb[0].mxu0 %v264_v26  ;;  %v5309_v26 = vld [vmem:[#allocation4 + $0x7e0] ss:$8 sps:$4 sm:$0xff]  }
 0x198   :  { %2894 = vmatpush1.bf16.msra.mxu0 %v5225_v27  ;;  %2925 = vmatprep.mubr.bf16.mxu0 %v267_v29  ;;  %v5317_v27 = vld [vmem:[#allocation4 + $0x7f4] ss:$8 sps:$4 sm:$0xff]   ;;  %v5374_v29 = vld [vmem:[#allocation4 + $0x3a4] ss:$8 sps:$4 sm:$0xff]  }
 0x199   :  { %2895 = vmatprep.subr.bf16.mxu0 %v5233_v28  ;;  %2709 = vmatpush1.bf16.msra.mxu1 %v5306_v46  ;;  %v5366_v28 = vld [vmem:[#allocation4 + $0x390] ss:$8 sps:$4 sm:$0xff]   ;;  %v5384_v46 = vld [vmem:[#allocation4 + $0x3c0] ss:$8 sps:$4 sm:$0xff]  }
 0x19a   :  { %2721 = vmatprep.subr.bf16.mxu1 %v5314_v50  ;;  %v5390_v50 = vld [vmem:[#allocation4 + $0x3d0] ss:$8 sps:$4 sm:$0xff]  }
 0x19c   :  { %2896 = vmatpush1.bf16.msra.mxu0 %v5231_v32  ;;  %2711 = vmatmul.mubr.bf16.vlgmr.msra.gmra.mrb[0].mxu1 %v256_v55  ;;  %v242_v32 = vld [vmem:[%s6527_s0 + $0x130] sm:$0xff] }
 0x19d   :  { %2897 = vmatprep.subr.bf16.mxu0 %v5239_v33  ;;  %2722 = vmatpush1.bf16.msra.mxu1 %v5312_v54  ;;  %v5323_v33 = vld [vmem:[#allocation4 + $0x804] ss:$8 sps:$4 sm:$0xff]   ;;  %v266_v38 = vpack.c.bf16 %v242_v32, %v218_v31  ;;  %v5396_v54 = vld [vmem:[#allocation4 + $0x3e0] ss:$8 sps:$4 sm:$0xff]   ;;  %v5404_v55 = vld [vmem:[#allocation4 + $0x3f4] ss:$8 sps:$4 sm:$0xff]  }
 0x19e   :  { %2723 = vmatprep.subr.bf16.mxu1 %v5320_v56  ;;  %2753 = vmatprep.mubr.bf16.mxu1 %v259_v58  ;;  %v5345_v56 = vld [vmem:[#allocation4 + $0x840] ss:$8 sps:$4 sm:$0xff]   ;;  %v5402_v58 = vld [vmem:[#allocation4 + $0x3f0] ss:$8 sps:$4 sm:$0xff]   ;;  %v5422_v31 = vld [vmem:[#allocation4 + $0x934] ss:$8 sps:$4 sm:$0xff]  }
 0x19f   :  { %v5420_v32 = vld [vmem:[#allocation4 + $0x930] ss:$8 sps:$4 sm:$0xff]  }
 0x1a0   :  { %2898 = vmatpush1.bf16.msra.mxu0 %v5237_v36  ;;  %v221_v36 = vld [vmem:[%s6527_s0 + $0x88] sm:$0xff] }
 0x1a1   :  { %2899 = vmatprep.subr.bf16.mxu0 %v5245_v37  ;;  %2724 = vmatpush1.bf16.msra.mxu1 %v5318_v60  ;;  %v245_v37 = vld [vmem:[%s6527_s0 + $0x148] sm:$0xff]  ;;  %v234_v60 = vld [vmem:[%s6527_s0 + $0xf0] sm:$0xff] }
 0x1a2   :  { %2725 = vmatprep.subr.bf16.mxu1 %v5326_v61  ;;  %v5351_v61 = vld [vmem:[#allocation4 + $0x850] ss:$8 sps:$4 sm:$0xff]  }
 0x1a4   :  { %2900 = vmatpush1.bf16.msra.mxu0 %v5243_v40  ;;  %v269_v40 = vpack.c.bf16 %v245_v37, %v221_v36  ;;  %v5426_v36 = vld [vmem:[#allocation4 + $0x950] ss:$8 sps:$4 sm:$0xff]   ;;  %v5431_v37 = vld [vmem:[#allocation4 + $0x964] ss:$8 sps:$4 sm:$0xff]  }
 0x1a5   :  { %2901 = vmatprep.subr.bf16.mxu0 %v5251_v41  ;;  %2726 = vmatpush1.bf16.msra.mxu1 %v5324_v0  ;;  %v5329_v41 = vld [vmem:[#allocation4 + $0x814] ss:$8 sps:$4 sm:$0xff]   ;;  %v5357_v0 = vld [vmem:[#allocation4 + $0x860] ss:$8 sps:$4 sm:$0xff]  }
 0x1a6   :  { %2727 = vmatprep.subr.bf16.mxu1 %v5332_v1  ;;  %v5365_v1 = vld [vmem:[#allocation4 + $0x874] ss:$8 sps:$4 sm:$0xff]  }
 0x1a8   :  { %2902 = vmatpush1.bf16.msra.mxu0 %v5249_v44  ;;  %v5327_v44 = vld [vmem:[#allocation4 + $0x810] ss:$8 sps:$4 sm:$0xff]  }
 0x1a9   :  { %2903 = vmatprep.subr.bf16.mxu0 %v5257_v45  ;;  %2728 = vmatpush1.bf16.msra.mxu1 %v5330_v4  ;;  %v5335_v45 = vld [vmem:[#allocation4 + $0x824] ss:$8 sps:$4 sm:$0xff]   ;;  %v5369_v4 = vld [vmem:[#allocation4 + $0x880] ss:$8 sps:$4 sm:$0xff]  }
 0x1aa   :  { %2729 = vmatprep.subr.bf16.mxu1 %v5338_v5  ;;  %v5377_v5 = vld [vmem:[#allocation4 + $0x894] ss:$8 sps:$4 sm:$0xff]  }
 0x1ac   :  { %2904 = vmatpush1.bf16.msra.mxu0 %v5255_v49  ;;  %v5341_v49 = vld [vmem:[#allocation4 + $0x834] ss:$8 sps:$4 sm:$0xff]  }
 0x1ad   :  { %2905 = vmatprep.subr.bf16.mxu0 %v5263_v51  ;;  %2730 = vmatpush1.bf16.msra.mxu1 %v5336_v8  ;;  %v5398_v51 = vld [vmem:[#allocation4 + $0x3e4] ss:$8 sps:$4 sm:$0xff]   ;;  %v5381_v8 = vld [vmem:[#allocation4 + $0x8a0] ss:$8 sps:$4 sm:$0xff]  }
 0x1ae   :  { %2731 = vmatprep.subr.bf16.mxu1 %v5344_v9  ;;  %v5389_v9 = vld [vmem:[#allocation4 + $0x8b4] ss:$8 sps:$4 sm:$0xff]  }
 0x1b0   :  { %2906 = vmatpush1.bf16.msra.mxu0 %v5261_v57  ;;  %v5353_v57 = vld [vmem:[#allocation4 + $0x854] ss:$8 sps:$4 sm:$0xff]  }
 0x1b1   :  { %2907 = vmatprep.subr.bf16.mxu0 %v5269_v59  ;;  %2732 = vmatpush1.bf16.msra.mxu1 %v5342_v12  ;;  %v210_v59 = vld [vmem:[%s6527_s0 + $0x30] sm:$0xff]  ;;  %v5393_v12 = vld [vmem:[#allocation4 + $0x8c0] ss:$8 sps:$4 sm:$0xff]  }
 0x1b2   :  { %2733 = vmatprep.subr.bf16.mxu1 %v5350_v13  ;;  %v5401_v13 = vld [vmem:[#allocation4 + $0x8d4] ss:$8 sps:$4 sm:$0xff]  }
 0x1b4   :  { %2908 = vmatpush1.bf16.msra.mxu0 %v5267_v62  ;;  %v5359_v62 = vld [vmem:[#allocation4 + $0x864] ss:$8 sps:$4 sm:$0xff]  }
 0x1b5   :  { %2909 = vmatprep.subr.bf16.mxu0 %v5275_v63  ;;  %2734 = vmatpush1.bf16.msra.mxu1 %v5348_v16  ;;  %v258_v63 = vpack.c.bf16 %v234_v60, %v210_v59  ;;  %v5405_v16 = vld [vmem:[#allocation4 + $0x8e0] ss:$8 sps:$4 sm:$0xff]   ;;  %v5461_v59 = vld [vmem:[#allocation4 + $0xa04] ss:$8 sps:$4 sm:$0xff]  }
 0x1b6   :  { %2735 = vmatprep.subr.bf16.mxu1 %v5356_v17  ;;  %v5410_v17 = vld [vmem:[#allocation4 + $0x8f4] ss:$8 sps:$4 sm:$0xff]   ;;  %v225_v60 = vld [vmem:[%s6527_s0 + $0xa8] sm:$0xff] }
 0x1b8   :  { %2910 = vmatpush1.bf16.msra.mxu0 %v5273_v2  ;;  %v5363_v2 = vld [vmem:[#allocation4 + $0x870] ss:$8 sps:$4 sm:$0xff]  }
 0x1b9   :  { %2911 = vmatprep.subr.bf16.mxu0 %v5281_v3  ;;  %2736 = vmatpush1.bf16.msra.mxu1 %v5354_v20  ;;  %v5371_v3 = vld [vmem:[#allocation4 + $0x884] ss:$8 sps:$4 sm:$0xff]  }
 0x1ba   :  { %2737 = vmatprep.subr.bf16.mxu1 %v5362_v21  ;;  %v244_v20 = vld [vmem:[%s6527_s0 + $0x140] sm:$0xff] }
 0x1bb   :  { %v5413_v21 = vld [vmem:[#allocation4 + $0x904] ss:$8 sps:$4 sm:$0xff]  }
 0x1bc   :  { %2912 = vmatpush1.bf16.msra.mxu0 %v5279_v6  ;;  %v5375_v6 = vld [vmem:[#allocation4 + $0x890] ss:$8 sps:$4 sm:$0xff]  }
 0x1bd   :  { %2913 = vmatprep.subr.bf16.mxu0 %v5287_v7  ;;  %2738 = vmatpush1.bf16.msra.mxu1 %v5360_v24  ;;  %v5383_v7 = vld [vmem:[#allocation4 + $0x8a4] ss:$8 sps:$4 sm:$0xff]  }
 0x1be   :  { %2739 = vmatprep.subr.bf16.mxu1 %v5368_v25  ;;  %v5411_v25 = vld [vmem:[#allocation4 + $0x900] ss:$8 sps:$4 sm:$0xff]  }
 0x1c0   :  { %2914 = vmatpush1.bf16.msra.mxu0 %v5285_v10  ;;  %v5387_v10 = vld [vmem:[#allocation4 + $0x8b0] ss:$8 sps:$4 sm:$0xff]  }
 0x1c1   :  { %2915 = vmatprep.subr.bf16.mxu0 %v5293_v11  ;;  %2740 = vmatpush1.bf16.msra.mxu1 %v5366_v28  ;;  %v5395_v11 = vld [vmem:[#allocation4 + $0x8c4] ss:$8 sps:$4 sm:$0xff]   ;;  %v5414_v28 = vld [vmem:[#allocation4 + $0x910] ss:$8 sps:$4 sm:$0xff]  }
 0x1c2   :  { %2741 = vmatprep.subr.bf16.mxu1 %v5374_v29  ;;  %v5419_v29 = vld [vmem:[#allocation4 + $0x924] ss:$8 sps:$4 sm:$0xff]  }
 0x1c4   :  { %2916 = vmatpush1.bf16.msra.mxu0 %v5291_v14  ;;  %v5399_v14 = vld [vmem:[#allocation4 + $0x8d0] ss:$8 sps:$4 sm:$0xff]  }
 0x1c5   :  { %2917 = vmatprep.subr.bf16.mxu0 %v5299_v15  ;;  %2742 = vmatpush1.bf16.msra.mxu1 %v5372_v34  ;;  %v5407_v15 = vld [vmem:[#allocation4 + $0x8e4] ss:$8 sps:$4 sm:$0xff]   ;;  %v5423_v34 = vld [vmem:[#allocation4 + $0x940] ss:$8 sps:$4 sm:$0xff]  }
 0x1c6   :  { %2743 = vmatprep.subr.bf16.mxu1 %v5380_v35  ;;  %v5428_v35 = vld [vmem:[#allocation4 + $0x954] ss:$8 sps:$4 sm:$0xff]  }
 0x1c8   :  { %2918 = vmatpush1.bf16.msra.mxu0 %v5297_v18  ;;  %v5408_v18 = vld [vmem:[#allocation4 + $0x8f0] ss:$8 sps:$4 sm:$0xff]  }
 0x1c9   :  { %2919 = vmatprep.subr.bf16.mxu0 %v5305_v19  ;;  %2744 = vmatpush1.bf16.msra.mxu1 %v5378_v42  ;;  %v220_v19 = vld [vmem:[%s6527_s0 + $0x80] sm:$0xff] }
 0x1ca   :  { %2745 = vmatprep.subr.bf16.mxu1 %v5386_v43  ;;  %v268_v24 = vpack.c.bf16 %v244_v20, %v220_v19  ;;  %v5435_v42 = vld [vmem:[#allocation4 + $0x980] ss:$8 sps:$4 sm:$0xff]   ;;  %v5440_v43 = vld [vmem:[#allocation4 + $0x994] ss:$8 sps:$4 sm:$0xff]  }
 0x1cb   :  { %v5567_v19 = vld [vmem:[#allocation8 + $0x40] ss:$8 sps:$4 sm:$0xff]   ;;  %v5572_v20 = vld [vmem:[#allocation8 + $0x54] ss:$8 sps:$4 sm:$0xff]  }
 0x1cc   :  { %2920 = vmatpush1.bf16.msra.mxu0 %v5303_v22  ;;  %v223_v22 = vld [vmem:[%s6527_s0 + $0x98] sm:$0xff] }
 0x1cd   :  { %2921 = vmatprep.subr.bf16.mxu0 %v5311_v23  ;;  %2746 = vmatpush1.bf16.msra.mxu1 %v5384_v46  ;;  %v247_v23 = vld [vmem:[%s6527_s0 + $0x158] sm:$0xff]  ;;  %v5441_v46 = vld [vmem:[#allocation4 + $0x9a0] ss:$8 sps:$4 sm:$0xff]  }
 0x1ce   :  { %2747 = vmatprep.subr.bf16.mxu1 %v5392_v47  ;;  %v5446_v47 = vld [vmem:[#allocation4 + $0x9b4] ss:$8 sps:$4 sm:$0xff]  }
 0x1d0   :  { %2922 = vmatpush1.bf16.msra.mxu0 %v5309_v26  ;;  %v271_v26 = vpack.c.bf16 %v247_v23, %v223_v22  ;;  %v5479_v22 = vld [vmem:[#allocation4 + $0xa64] ss:$8 sps:$4 sm:$0xff]   ;;  %v5570_v23 = vld [vmem:[#allocation8 + $0x50] ss:$8 sps:$4 sm:$0xff]  }
 0x1d1   :  { %2923 = vmatprep.subr.bf16.mxu0 %v5317_v27  ;;  %2748 = vmatpush1.bf16.msra.mxu1 %v5390_v50  ;;  %v5416_v27 = vld [vmem:[#allocation4 + $0x914] ss:$8 sps:$4 sm:$0xff]   ;;  %v5447_v50 = vld [vmem:[#allocation4 + $0x9c0] ss:$8 sps:$4 sm:$0xff]  }
 0x1d2   :  { %2749 = vmatprep.subr.bf16.mxu1 %v5398_v51  ;;  %v5452_v51 = vld [vmem:[#allocation4 + $0x9d4] ss:$8 sps:$4 sm:$0xff]  }
 0x1d4   :  { %2924 = vmatpush1.bf16.msra.mxu0 %v5315_v30  ;;  %v5417_v30 = vld [vmem:[#allocation4 + $0x920] ss:$8 sps:$4 sm:$0xff]  }
 0x1d5   :  { %2936 = vmatprep.subr.bf16.mxu0 %v5323_v33  ;;  %2750 = vmatpush1.bf16.msra.mxu1 %v5396_v54  ;;  %v5425_v33 = vld [vmem:[#allocation4 + $0x944] ss:$8 sps:$4 sm:$0xff]   ;;  %v5453_v54 = vld [vmem:[#allocation4 + $0x9e0] ss:$8 sps:$4 sm:$0xff]  }
 0x1d6   :  { %2751 = vmatprep.subr.bf16.mxu1 %v5404_v55  ;;  %v5458_v55 = vld [vmem:[#allocation4 + $0x9f4] ss:$8 sps:$4 sm:$0xff]  }
 0x1d7   :  { %2926 = vmatmul.mubr.bf16.vlgmr.msra.gmra.mrb[0].mxu0 %v266_v38  ;;  %v5429_v38 = vld [vmem:[#allocation4 + $0x960] ss:$8 sps:$4 sm:$0xff]  }
 0x1d8   :  { %2937 = vmatpush1.bf16.msra.mxu0 %v5321_v39  ;;  %2968 = vmatprep.mubr.bf16.mxu0 %v269_v40  ;;  %v5434_v39 = vld [vmem:[#allocation4 + $0x974] ss:$8 sps:$4 sm:$0xff]   ;;  %v5432_v40 = vld [vmem:[#allocation4 + $0x970] ss:$8 sps:$4 sm:$0xff]  }
 0x1d9   :  { %2938 = vmatprep.subr.bf16.mxu0 %v5329_v41  ;;  %2752 = vmatpush1.bf16.msra.mxu1 %v5402_v58  ;;  %v5437_v41 = vld [vmem:[#allocation4 + $0x984] ss:$8 sps:$4 sm:$0xff]   ;;  %v246_v58 = vld [vmem:[%s6527_s0 + $0x150] sm:$0xff] }
 0x1dc   :  { %2939 = vmatpush1.bf16.msra.mxu0 %v5327_v44  ;;  %2754 = vmatmul.mubr.bf16.vlgmr.msra.gmra.mrb[0].mxu1 %v258_v63  ;;  %v5438_v44 = vld [vmem:[#allocation4 + $0x990] ss:$8 sps:$4 sm:$0xff]   ;;  %v5459_v63 = vld [vmem:[#allocation4 + $0xa00] ss:$8 sps:$4 sm:$0xff]  }
 0x1dd   :  { %2940 = vmatprep.subr.bf16.mxu0 %v5335_v45  ;;  %v5443_v45 = vld [vmem:[#allocation4 + $0x9a4] ss:$8 sps:$4 sm:$0xff]  }
 0x1e0   :  { %2941 = vmatpush1.bf16.msra.mxu0 %v5333_v48  ;;  %v5444_v48 = vld [vmem:[#allocation4 + $0x9b0] ss:$8 sps:$4 sm:$0xff]  }
 0x1e1   :  { %2942 = vmatprep.subr.bf16.mxu0 %v5341_v49  ;;  %v5449_v49 = vld [vmem:[#allocation4 + $0x9c4] ss:$8 sps:$4 sm:$0xff]  }
 0x1e4   :  { %2943 = vmatpush1.bf16.msra.mxu0 %v5339_v52  ;;  %v5450_v52 = vld [vmem:[#allocation4 + $0x9d0] ss:$8 sps:$4 sm:$0xff]  }
 0x1e5   :  { %2944 = vmatprep.subr.bf16.mxu0 %v5347_v53  ;;  %v5455_v53 = vld [vmem:[#allocation4 + $0x9e4] ss:$8 sps:$4 sm:$0xff]  }
 0x1e8   :  { %2945 = vmatpush1.bf16.msra.mxu0 %v5345_v56  ;;  %v5456_v56 = vld [vmem:[#allocation4 + $0x9f0] ss:$8 sps:$4 sm:$0xff]  }
 0x1e9   :  { %2946 = vmatprep.subr.bf16.mxu0 %v5353_v57  ;;  %v222_v57 = vld [vmem:[%s6527_s0 + $0x90] sm:$0xff] }
 0x1ec   :  { %2947 = vmatpush1.bf16.msra.mxu0 %v5351_v61  ;;  %v249_v61 = vld [vmem:[%s6527_s0 + $0x168] sm:$0xff] }
 0x1ed   :  { %2948 = vmatprep.subr.bf16.mxu0 %v5359_v62  ;;  %v270_v62 = vpack.c.bf16 %v246_v58, %v222_v57  ;;  %v5506_v57 = vld [vmem:[#allocation4 + $0xaf4] ss:$8 sps:$4 sm:$0xff]   ;;  %v5504_v58 = vld [vmem:[#allocation4 + $0xaf0] ss:$8 sps:$4 sm:$0xff]  }
 0x1f0   :  { %2949 = vmatpush1.bf16.msra.mxu0 %v5357_v0  ;;  %v273_v0 = vpack.c.bf16 %v249_v61, %v225_v60  ;;  %v248_v60 = vld [vmem:[%s6527_s0 + $0x160] sm:$0xff] }
 0x1f1   :  { %2950 = vmatprep.subr.bf16.mxu0 %v5365_v1  ;;  %v5464_v1 = vld [vmem:[#allocation4 + $0xa14] ss:$8 sps:$4 sm:$0xff]   ;;  %v5509_v61 = vld [vmem:[#allocation4 + $0xb04] ss:$8 sps:$4 sm:$0xff]  }
 0x1f4   :  { %2951 = vmatpush1.bf16.msra.mxu0 %v5363_v2  ;;  %v5555_v2 = vld [vmem:[#allocation8] ss:$8 sps:$4 sm:$0xff]  }
 0x1f5   :  { %2952 = vmatprep.subr.bf16.mxu0 %v5371_v3  ;;  %v5557_v3 = vld [vmem:[#allocation8 + $0x4] ss:$8 sps:$4 sm:$0xff]  }
 0x1f6   :  { %3318 = vmatprep.subr.bf16.mxu1 %v5557_v3  ;;  %v5512_v3 = vld [vmem:[#allocation4 + $0xb14] ss:$8 sps:$4 sm:$0xff]  }
 0x1f7   :  { %3319 = vmatpush1.bf16.msra.mxu1 %v5555_v2 }
 0x1f8   :  { %2953 = vmatpush1.bf16.msra.mxu0 %v5369_v4  ;;  %v5462_v4 = vld [vmem:[#allocation4 + $0xa10] ss:$8 sps:$4 sm:$0xff]  }
 0x1f9   :  { %2954 = vmatprep.subr.bf16.mxu0 %v5377_v5  ;;  %v5560_v5 = vld [vmem:[#allocation8 + $0x14] ss:$8 sps:$4 sm:$0xff]  }
 0x1fa   :  { %3320 = vmatprep.subr.bf16.mxu1 %v5560_v5  ;;  %v5515_v5 = vld [vmem:[#allocation4 + $0xb24] ss:$8 sps:$4 sm:$0xff]  }
 0x1fc   :  { %2955 = vmatpush1.bf16.msra.mxu0 %v5375_v6  ;;  %v5467_v6 = vld [vmem:[#allocation4 + $0xa24] ss:$8 sps:$4 sm:$0xff]  }
 0x1fd   :  { %2956 = vmatprep.subr.bf16.mxu0 %v5383_v7  ;;  %v5558_v7 = vld [vmem:[#allocation8 + $0x10] ss:$8 sps:$4 sm:$0xff]  }
 0x1fe   :  { %3321 = vmatpush1.bf16.msra.mxu1 %v5558_v7  ;;  %v5518_v7 = vld [vmem:[#allocation4 + $0xb34] ss:$8 sps:$4 sm:$0xff]  }
 0x200   :  { %2957 = vmatpush1.bf16.msra.mxu0 %v5381_v8  ;;  %v5563_v8 = vld [vmem:[#allocation8 + $0x24] ss:$8 sps:$4 sm:$0xff]  }
 0x201   :  { %2958 = vmatprep.subr.bf16.mxu0 %v5389_v9  ;;  %v5465_v9 = vld [vmem:[#allocation4 + $0xa20] ss:$8 sps:$4 sm:$0xff]   ;;  %3322 = vmatprep.subr.bf16.mxu1 %v5563_v8  ;;  %v5516_v8 = vld [vmem:[#allocation4 + $0xb30] ss:$8 sps:$4 sm:$0xff]  }
 0x204   :  { %2959 = vmatpush1.bf16.msra.mxu0 %v5387_v10  ;;  %v5470_v10 = vld [vmem:[#allocation4 + $0xa34] ss:$8 sps:$4 sm:$0xff]  }
 0x205   :  { %2960 = vmatprep.subr.bf16.mxu0 %v5395_v11  ;;  %v5561_v11 = vld [vmem:[#allocation8 + $0x20] ss:$8 sps:$4 sm:$0xff]  }
 0x206   :  { %3323 = vmatpush1.bf16.msra.mxu1 %v5561_v11  ;;  %v5524_v11 = vld [vmem:[#allocation4 + $0xb54] ss:$8 sps:$4 sm:$0xff]  }
 0x208   :  { %2961 = vmatpush1.bf16.msra.mxu0 %v5393_v12  ;;  %v5566_v12 = vld [vmem:[#allocation8 + $0x34] ss:$8 sps:$4 sm:$0xff]  }
 0x209   :  { %2962 = vmatprep.subr.bf16.mxu0 %v5401_v13  ;;  %v5468_v13 = vld [vmem:[#allocation4 + $0xa30] ss:$8 sps:$4 sm:$0xff]   ;;  %3324 = vmatprep.subr.bf16.mxu1 %v5566_v12 }
 0x20a   :  { %v5522_v12 = vld [vmem:[#allocation4 + $0xb50] ss:$8 sps:$4 sm:$0xff]  }
 0x20c   :  { %2963 = vmatpush1.bf16.msra.mxu0 %v5399_v14  ;;  %v5473_v14 = vld [vmem:[#allocation4 + $0xa44] ss:$8 sps:$4 sm:$0xff]  }
 0x20d   :  { %2964 = vmatprep.subr.bf16.mxu0 %v5407_v15  ;;  %v5564_v15 = vld [vmem:[#allocation8 + $0x30] ss:$8 sps:$4 sm:$0xff]  }
 0x20e   :  { %3325 = vmatpush1.bf16.msra.mxu1 %v5564_v15  ;;  %v5530_v15 = vld [vmem:[#allocation4 + $0xb74] ss:$8 sps:$4 sm:$0xff]  }
 0x210   :  { %2965 = vmatpush1.bf16.msra.mxu0 %v5405_v16  ;;  %v5569_v16 = vld [vmem:[#allocation8 + $0x44] ss:$8 sps:$4 sm:$0xff]  }
 0x211   :  { %2966 = vmatprep.subr.bf16.mxu0 %v5410_v17  ;;  %v5471_v17 = vld [vmem:[#allocation4 + $0xa40] ss:$8 sps:$4 sm:$0xff]   ;;  %3326 = vmatprep.subr.bf16.mxu1 %v5569_v16  ;;  %v5528_v16 = vld [vmem:[#allocation4 + $0xb70] ss:$8 sps:$4 sm:$0xff]  }
 0x212   :  { %3327 = vmatpush1.bf16.msra.mxu1 %v5567_v19  ;;  %v5536_v19 = vld [vmem:[#allocation4 + $0xb94] ss:$8 sps:$4 sm:$0xff]  }
 0x213   :  { %3328 = vmatprep.subr.bf16.mxu1 %v5572_v20  ;;  %v5534_v20 = vld [vmem:[#allocation4 + $0xb90] ss:$8 sps:$4 sm:$0xff]  }
 0x214   :  { %2967 = vmatpush1.bf16.msra.mxu0 %v5408_v18  ;;  %v5476_v18 = vld [vmem:[#allocation4 + $0xa54] ss:$8 sps:$4 sm:$0xff]  }
 0x215   :  { %2979 = vmatprep.subr.bf16.mxu0 %v5413_v21  ;;  %v5474_v21 = vld [vmem:[#allocation4 + $0xa50] ss:$8 sps:$4 sm:$0xff]  }
 0x216   :  { %3329 = vmatpush1.bf16.msra.mxu1 %v5570_v23  ;;  %v5542_v23 = vld [vmem:[#allocation4 + $0xbb4] ss:$8 sps:$4 sm:$0xff]  }
 0x217   :  { %2969 = vmatmul.mubr.bf16.vlgmr.msra.gmra.mrb[0].mxu0 %v268_v24  ;;  %v5575_v24 = vld [vmem:[#allocation8 + $0x64] ss:$8 sps:$4 sm:$0xff]  }
 0x218   :  { %2980 = vmatpush1.bf16.msra.mxu0 %v5411_v25  ;;  %3011 = vmatprep.mubr.bf16.mxu0 %v271_v26  ;;  %v5477_v25 = vld [vmem:[#allocation4 + $0xa60] ss:$8 sps:$4 sm:$0xff]   ;;  %v5482_v26 = vld [vmem:[#allocation4 + $0xa74] ss:$8 sps:$4 sm:$0xff]  }
 0x219   :  { %2981 = vmatprep.subr.bf16.mxu0 %v5416_v27  ;;  %v5573_v27 = vld [vmem:[#allocation8 + $0x60] ss:$8 sps:$4 sm:$0xff]   ;;  %3330 = vmatprep.subr.bf16.mxu1 %v5575_v24 }
 0x21a   :  { %3331 = vmatpush1.bf16.msra.mxu1 %v5573_v27  ;;  %v5545_v27 = vld [vmem:[#allocation4 + $0xbc4] ss:$8 sps:$4 sm:$0xff]  }
 0x21c   :  { %2982 = vmatpush1.bf16.msra.mxu0 %v5414_v28  ;;  %v5578_v28 = vld [vmem:[#allocation8 + $0x74] ss:$8 sps:$4 sm:$0xff]  }
 0x21d   :  { %2983 = vmatprep.subr.bf16.mxu0 %v5419_v29  ;;  %v5480_v29 = vld [vmem:[#allocation4 + $0xa70] ss:$8 sps:$4 sm:$0xff]   ;;  %3332 = vmatprep.subr.bf16.mxu1 %v5578_v28 }
 0x220   :  { %2984 = vmatpush1.bf16.msra.mxu0 %v5417_v30  ;;  %v5485_v30 = vld [vmem:[#allocation4 + $0xa84] ss:$8 sps:$4 sm:$0xff]  }
 0x221   :  { %2985 = vmatprep.subr.bf16.mxu0 %v5422_v31  ;;  %v5576_v31 = vld [vmem:[#allocation8 + $0x70] ss:$8 sps:$4 sm:$0xff]  }
 0x222   :  { %3333 = vmatpush1.bf16.msra.mxu1 %v5576_v31  ;;  %v5548_v31 = vld [vmem:[#allocation4 + $0xbd4] ss:$8 sps:$4 sm:$0xff]  }
 0x224   :  { %2986 = vmatpush1.bf16.msra.mxu0 %v5420_v32  ;;  %v5581_v32 = vld [vmem:[#allocation8 + $0x84] ss:$8 sps:$4 sm:$0xff]  }
 0x225   :  { %2987 = vmatprep.subr.bf16.mxu0 %v5425_v33  ;;  %v5483_v33 = vld [vmem:[#allocation4 + $0xa80] ss:$8 sps:$4 sm:$0xff]   ;;  %3334 = vmatprep.subr.bf16.mxu1 %v5581_v32  ;;  %v5546_v32 = vld [vmem:[#allocation4 + $0xbd0] ss:$8 sps:$4 sm:$0xff]  }
 0x228   :  { %2988 = vmatpush1.bf16.msra.mxu0 %v5423_v34  ;;  %v5488_v34 = vld [vmem:[#allocation4 + $0xa94] ss:$8 sps:$4 sm:$0xff]  }
 0x229   :  { %2989 = vmatprep.subr.bf16.mxu0 %v5428_v35  ;;  %v5579_v35 = vld [vmem:[#allocation8 + $0x80] ss:$8 sps:$4 sm:$0xff]  }
 0x22a   :  { %3335 = vmatpush1.bf16.msra.mxu1 %v5579_v35  ;;  %v5554_v35 = vld [vmem:[#allocation4 + $0xbf4] ss:$8 sps:$4 sm:$0xff]  }
 0x22c   :  { %2990 = vmatpush1.bf16.msra.mxu0 %v5426_v36  ;;  %v5584_v36 = vld [vmem:[#allocation8 + $0x94] ss:$8 sps:$4 sm:$0xff]  }
 0x22d   :  { %2991 = vmatprep.subr.bf16.mxu0 %v5431_v37  ;;  %v5486_v37 = vld [vmem:[#allocation4 + $0xa90] ss:$8 sps:$4 sm:$0xff]   ;;  %3336 = vmatprep.subr.bf16.mxu1 %v5584_v36 }
 0x22e   :  { %v5552_v36 = vld [vmem:[#allocation4 + $0xbf0] ss:$8 sps:$4 sm:$0xff]  }
 0x230   :  { %2992 = vmatpush1.bf16.msra.mxu0 %v5429_v38  ;;  %v5491_v38 = vld [vmem:[#allocation4 + $0xaa4] ss:$8 sps:$4 sm:$0xff]  }
 0x231   :  { %2993 = vmatprep.subr.bf16.mxu0 %v5434_v39  ;;  %v5582_v39 = vld [vmem:[#allocation8 + $0x90] ss:$8 sps:$4 sm:$0xff]  }
 0x232   :  { %3337 = vmatpush1.bf16.msra.mxu1 %v5582_v39 }
 0x234   :  { %2994 = vmatpush1.bf16.msra.mxu0 %v5432_v40  ;;  %v5587_v40 = vld [vmem:[#allocation8 + $0xa4] ss:$8 sps:$4 sm:$0xff]  }
 0x235   :  { %2995 = vmatprep.subr.bf16.mxu0 %v5437_v41  ;;  %v5489_v41 = vld [vmem:[#allocation4 + $0xaa0] ss:$8 sps:$4 sm:$0xff]   ;;  %3338 = vmatprep.subr.bf16.mxu1 %v5587_v40 }
 0x236   :  { %v5599_v40 = vld [vmem:[#allocation8 + $0xe4] ss:$8 sps:$4 sm:$0xff]  }
 0x238   :  { %2996 = vmatpush1.bf16.msra.mxu0 %v5435_v42  ;;  %v5494_v42 = vld [vmem:[#allocation4 + $0xab4] ss:$8 sps:$4 sm:$0xff]  }
 0x239   :  { %2997 = vmatprep.subr.bf16.mxu0 %v5440_v43  ;;  %v5585_v43 = vld [vmem:[#allocation8 + $0xa0] ss:$8 sps:$4 sm:$0xff]  }
 0x23a   :  { %3339 = vmatpush1.bf16.msra.mxu1 %v5585_v43  ;;  %v5600_v43 = vld [vmem:[#allocation8 + $0xf0] ss:$8 sps:$4 sm:$0xff]  }
 0x23c   :  { %2998 = vmatpush1.bf16.msra.mxu0 %v5438_v44  ;;  %v5590_v44 = vld [vmem:[#allocation8 + $0xb4] ss:$8 sps:$4 sm:$0xff]  }
 0x23d   :  { %2999 = vmatprep.subr.bf16.mxu0 %v5443_v45  ;;  %v5492_v45 = vld [vmem:[#allocation4 + $0xab0] ss:$8 sps:$4 sm:$0xff]   ;;  %3340 = vmatprep.subr.bf16.mxu1 %v5590_v44 }
 0x23e   :  { %v5605_v44 = vld [vmem:[#allocation11 + $0x4] ss:$8 sps:$4 sm:$0xff]  }
 0x240   :  { %3000 = vmatpush1.bf16.msra.mxu0 %v5441_v46  ;;  %v5497_v46 = vld [vmem:[#allocation4 + $0xac4] ss:$8 sps:$4 sm:$0xff]  }
 0x241   :  { %3001 = vmatprep.subr.bf16.mxu0 %v5446_v47  ;;  %v5588_v47 = vld [vmem:[#allocation8 + $0xb0] ss:$8 sps:$4 sm:$0xff]  }
 0x242   :  { %3341 = vmatpush1.bf16.msra.mxu1 %v5588_v47 }
 0x244   :  { %3002 = vmatpush1.bf16.msra.mxu0 %v5444_v48  ;;  %v5593_v48 = vld [vmem:[#allocation8 + $0xc4] ss:$8 sps:$4 sm:$0xff]  }
 0x245   :  { %3003 = vmatprep.subr.bf16.mxu0 %v5449_v49  ;;  %v5495_v49 = vld [vmem:[#allocation4 + $0xac0] ss:$8 sps:$4 sm:$0xff]   ;;  %3342 = vmatprep.subr.bf16.mxu1 %v5593_v48 }
 0x246   :  { %v660_v48 = vld [vmem:[#allocation6] sm:$0x3] }
 0x248   :  { %3004 = vmatpush1.bf16.msra.mxu0 %v5447_v50  ;;  %v5500_v50 = vld [vmem:[#allocation4 + $0xad4] ss:$8 sps:$4 sm:$0xff]  }
 0x249   :  { %3005 = vmatprep.subr.bf16.mxu0 %v5452_v51  ;;  %v5591_v51 = vld [vmem:[#allocation8 + $0xc0] ss:$8 sps:$4 sm:$0xff]  }
 0x24a   :  { %3343 = vmatpush1.bf16.msra.mxu1 %v5591_v51 }
 0x24c   :  { %3006 = vmatpush1.bf16.msra.mxu0 %v5450_v52  ;;  %v5596_v52 = vld [vmem:[#allocation8 + $0xd4] ss:$8 sps:$4 sm:$0xff]  }
 0x24d   :  { %3007 = vmatprep.subr.bf16.mxu0 %v5455_v53  ;;  %v5498_v53 = vld [vmem:[#allocation4 + $0xad0] ss:$8 sps:$4 sm:$0xff]   ;;  %3344 = vmatprep.subr.bf16.mxu1 %v5596_v52 }
 0x250   :  { %3008 = vmatpush1.bf16.msra.mxu0 %v5453_v54  ;;  %v5503_v54 = vld [vmem:[#allocation4 + $0xae4] ss:$8 sps:$4 sm:$0xff]  }
 0x251   :  { %3009 = vmatprep.subr.bf16.mxu0 %v5458_v55  ;;  %v5594_v55 = vld [vmem:[#allocation8 + $0xd0] ss:$8 sps:$4 sm:$0xff]  }
 0x252   :  { %3345 = vmatpush1.bf16.msra.mxu1 %v5594_v55 }
 0x253   :  { %3346 = vmatprep.subr.bf16.mxu1 %v5599_v40 }
 0x254   :  { %3010 = vmatpush1.bf16.msra.mxu0 %v5456_v56  ;;  %v5501_v56 = vld [vmem:[#allocation4 + $0xae0] ss:$8 sps:$4 sm:$0xff]  }
 0x255   :  { %3022 = vmatprep.subr.bf16.mxu0 %v5461_v59  ;;  %v224_v59 = vld [vmem:[%s6527_s0 + $0xa0] sm:$0xff] }
 0x257   :  { %3012 = vmatmul.mubr.bf16.vlgmr.msra.gmra.mrb[0].mxu0 %v270_v62  ;;  %v227_v62 = vld [vmem:[%s6527_s0 + $0xb8] sm:$0xff] }
 0x258   :  { %3023 = vmatpush1.bf16.msra.mxu0 %v5459_v63  ;;  %3054 = vmatprep.mubr.bf16.mxu0 %v273_v0  ;;  %v251_v63 = vld [vmem:[%s6527_s0 + $0x178] sm:$0xff]  ;;  %v272_v0 = vpack.c.bf16 %v248_v60, %v224_v59 }
 0x259   :  { %3024 = vmatprep.subr.bf16.mxu0 %v5464_v1  ;;  %v5507_v1 = vld [vmem:[#allocation4 + $0xb00] ss:$8 sps:$4 sm:$0xff]   ;;  %v275_v2 = vpack.c.bf16 %v251_v63, %v227_v62 }
 0x25c   :  { %3025 = vmatpush1.bf16.msra.mxu0 %v5462_v4  ;;  %v5510_v4 = vld [vmem:[#allocation4 + $0xb10] ss:$8 sps:$4 sm:$0xff]  }
 0x25d   :  { %3026 = vmatprep.subr.bf16.mxu0 %v5467_v6  ;;  %v5513_v6 = vld [vmem:[#allocation4 + $0xb20] ss:$8 sps:$4 sm:$0xff]  }
 0x260   :  { %3027 = vmatpush1.bf16.msra.mxu0 %v5465_v9  ;;  %v5521_v9 = vld [vmem:[#allocation4 + $0xb44] ss:$8 sps:$4 sm:$0xff]  }
 0x261   :  { %3028 = vmatprep.subr.bf16.mxu0 %v5470_v10  ;;  %v5519_v10 = vld [vmem:[#allocation4 + $0xb40] ss:$8 sps:$4 sm:$0xff]  }
 0x264   :  { %3029 = vmatpush1.bf16.msra.mxu0 %v5468_v13  ;;  %v5527_v13 = vld [vmem:[#allocation4 + $0xb64] ss:$8 sps:$4 sm:$0xff]  }
 0x265   :  { %3030 = vmatprep.subr.bf16.mxu0 %v5473_v14  ;;  %v5525_v14 = vld [vmem:[#allocation4 + $0xb60] ss:$8 sps:$4 sm:$0xff]  }
 0x268   :  { %3031 = vmatpush1.bf16.msra.mxu0 %v5471_v17  ;;  %v5533_v17 = vld [vmem:[#allocation4 + $0xb84] ss:$8 sps:$4 sm:$0xff]  }
 0x269   :  { %3032 = vmatprep.subr.bf16.mxu0 %v5476_v18  ;;  %v5531_v18 = vld [vmem:[#allocation4 + $0xb80] ss:$8 sps:$4 sm:$0xff]  }
 0x26c   :  { %3033 = vmatpush1.bf16.msra.mxu0 %v5474_v21  ;;  %v5539_v21 = vld [vmem:[#allocation4 + $0xba4] ss:$8 sps:$4 sm:$0xff]  }
 0x26d   :  { %3034 = vmatprep.subr.bf16.mxu0 %v5479_v22  ;;  %v5537_v22 = vld [vmem:[#allocation4 + $0xba0] ss:$8 sps:$4 sm:$0xff]  }
 0x270   :  { %3035 = vmatpush1.bf16.msra.mxu0 %v5477_v25  ;;  %v5540_v25 = vld [vmem:[#allocation4 + $0xbb0] ss:$8 sps:$4 sm:$0xff]  }
 0x271   :  { %3036 = vmatprep.subr.bf16.mxu0 %v5482_v26 }
 0x274   :  { %3037 = vmatpush1.bf16.msra.mxu0 %v5480_v29 }
 0x275   :  { %3038 = vmatprep.subr.bf16.mxu0 %v5485_v30  ;;  %v5543_v30 = vld [vmem:[#allocation4 + $0xbc0] ss:$8 sps:$4 sm:$0xff]  }
 0x278   :  { %3039 = vmatpush1.bf16.msra.mxu0 %v5483_v33  ;;  %v5551_v33 = vld [vmem:[#allocation4 + $0xbe4] ss:$8 sps:$4 sm:$0xff]  }
 0x279   :  { %3040 = vmatprep.subr.bf16.mxu0 %v5488_v34  ;;  %v5549_v34 = vld [vmem:[#allocation4 + $0xbe0] ss:$8 sps:$4 sm:$0xff]  }
 0x27c   :  { %3041 = vmatpush1.bf16.msra.mxu0 %v5486_v37  ;;  %v226_v37 = vld [vmem:[%s6527_s0 + $0xb0] sm:$0xff] }
 0x27d   :  { %3042 = vmatprep.subr.bf16.mxu0 %v5491_v38  ;;  %v250_v38 = vld [vmem:[%s6527_s0 + $0x170] sm:$0xff] }
 0x27e   :  { %v274_v39 = vpack.c.bf16 %v250_v38, %v226_v37  ;;  %v5653_v37 = vld [vmem:[#allocation14 + $0x4] ss:$8 sps:$4 sm:$0xff]   ;;  %v3146_v38 = vld [vmem:[#allocation9] sm:$0x3] }
 0x280   :  { %3043 = vmatpush1.bf16.msra.mxu0 %v5489_v41  ;;  %v5597_v41 = vld [vmem:[#allocation8 + $0xe0] ss:$8 sps:$4 sm:$0xff]  }
 0x281   :  { %3044 = vmatprep.subr.bf16.mxu0 %v5494_v42  ;;  %3347 = vmatpush1.bf16.msra.mxu1 %v5597_v41  ;;  %v5602_v42 = vld [vmem:[#allocation8 + $0xf4] ss:$8 sps:$4 sm:$0xff]  }
 0x282   :  { %3348 = vmatprep.subr.bf16.mxu1 %v5602_v42 }
 0x284   :  { %3045 = vmatpush1.bf16.msra.mxu0 %v5492_v45  ;;  %v662_v45 = vlaneseq }
 0x285   :  { %3046 = vmatprep.subr.bf16.mxu0 %v5497_v46  ;;  %3349 = vmatpush1.bf16.msra.mxu1 %v5600_v43 }
 0x286   :  { %3572 = vmatprep.subr.bf16.mxu1 %v5605_v44  ;;  %v663_v46 = vshrl.u32 %v662_v45, 7 }
 0x288   :  { %3047 = vmatpush1.bf16.msra.mxu0 %v5495_v49  ;;  %v6461_v47 = vsub.s32 0, %v663_v46  ;;  %v6463_v49 = vsub.s32 1, %v663_v46 }
 0x289   :  { %3048 = vmatprep.subr.bf16.mxu0 %v5500_v50 }
 0x28a   :  { %v665_v50 = vrot.slane %v660_v48, %v6461_v47  ;;  %v669_v51 = vrot.slane %v660_v48, %v6463_v49  ;;  %v3155_v40 = vrot.slane %v3146_v38, %v6463_v49 }
 0x28c   :  { %3049 = vmatpush1.bf16.msra.mxu0 %v5498_v53 }
 0x28d   :  { %3050 = vmatprep.subr.bf16.mxu0 %v5503_v54 }
 0x290   :  { %3051 = vmatpush1.bf16.msra.mxu0 %v5501_v56 }
 0x291   :  { %3052 = vmatprep.subr.bf16.mxu0 %v5506_v57 }
 0x294   :  { %3053 = vmatpush1.bf16.msra.mxu0 %v5504_v58 }
 0x295   :  { %3065 = vmatprep.subr.bf16.mxu0 %v5509_v61 }
 0x297   :  { %3055 = vmatmul.mubr.bf16.vlgmr.msra.gmra.mrb[0].mxu0 %v272_v0 }
 0x298   :  { %3066 = vmatpush1.bf16.msra.mxu0 %v5507_v1  ;;  %3097 = vmatprep.mubr.bf16.mxu0 %v275_v2 }
 0x299   :  { %3067 = vmatprep.subr.bf16.mxu0 %v5512_v3 }
 0x29c   :  { %3068 = vmatpush1.bf16.msra.mxu0 %v5510_v4 }
 0x29d   :  { %3069 = vmatprep.subr.bf16.mxu0 %v5515_v5 }
 0x2a0   :  { %3070 = vmatpush1.bf16.msra.mxu0 %v5513_v6  ;;  %v5603_v6 = vld [vmem:[#allocation11] ss:$8 sps:$4 sm:$0xff]  }
 0x2a1   :  { %3071 = vmatprep.subr.bf16.mxu0 %v5518_v7  ;;  %v5608_v7 = vld [vmem:[#allocation11 + $0x14] ss:$8 sps:$4 sm:$0xff]  }
 0x2a4   :  { %3072 = vmatpush1.bf16.msra.mxu0 %v5516_v8  ;;  %v5606_v8 = vld [vmem:[#allocation11 + $0x10] ss:$8 sps:$4 sm:$0xff]  }
 0x2a5   :  { %3073 = vmatprep.subr.bf16.mxu0 %v5521_v9  ;;  %v5611_v9 = vld [vmem:[#allocation11 + $0x24] ss:$8 sps:$4 sm:$0xff]  }
 0x2a8   :  { %3074 = vmatpush1.bf16.msra.mxu0 %v5519_v10  ;;  %v5609_v10 = vld [vmem:[#allocation11 + $0x20] ss:$8 sps:$4 sm:$0xff]  }
 0x2a9   :  { %3075 = vmatprep.subr.bf16.mxu0 %v5524_v11  ;;  %v5614_v11 = vld [vmem:[#allocation11 + $0x34] ss:$8 sps:$4 sm:$0xff]  }
 0x2ac   :  { %3076 = vmatpush1.bf16.msra.mxu0 %v5522_v12  ;;  %v5612_v12 = vld [vmem:[#allocation11 + $0x30] ss:$8 sps:$4 sm:$0xff]  }
 0x2ad   :  { %3077 = vmatprep.subr.bf16.mxu0 %v5527_v13  ;;  %v5617_v13 = vld [vmem:[#allocation11 + $0x44] ss:$8 sps:$4 sm:$0xff]  }
 0x2af   :  { %v2755_v24 = vpop.f32.mrb[0].mxu1 }
 0x2b0   :  { %3078 = vmatpush1.bf16.msra.mxu0 %v5525_v14  ;;  %v2757_v26 = vpop.f32.mrb[1].mxu1  ;;  %v4915_v52 = vadd.f32 %v2755_v24, %v665_v50  ;;  %v5615_v14 = vld [vmem:[#allocation11 + $0x40] ss:$8 sps:$4 sm:$0xff]   ;;  %v5630_v24 = vld [vmem:[#allocation11 + $0x90] ss:$8 sps:$4 sm:$0xff]  }
 0x2b1   :  { %3079 = vmatprep.subr.bf16.mxu0 %v5530_v15  ;;  %v2759_v28 = vpop.f32.mrb[2].mxu1  ;;  %v4917_v53 = vadd.f32 %v2757_v26, %v669_v51  ;;  %v5620_v15 = vld [vmem:[#allocation11 + $0x54] ss:$8 sps:$4 sm:$0xff]   ;;  %v5633_v26 = vld [vmem:[#allocation11 + $0xa0] ss:$8 sps:$4 sm:$0xff]  }
 0x2b2   :  { %v2761_v29 = vpop.f32.mrb[3].mxu1  ;;  %v4919_v55 = vadd.f32 %v2759_v28, %v665_v50  ;;  %v5636_v28 = vld [vmem:[#allocation11 + $0xb0] ss:$8 sps:$4 sm:$0xff]  }
 0x2b3   :  { %v4921_v58 = vadd.f32 %v2761_v29, %v669_v51  ;;  %v5641_v29 = vld [vmem:[#allocation11 + $0xc4] ss:$8 sps:$4 sm:$0xff]  }
 0x2b4   :  { %3080 = vmatpush1.bf16.msra.mxu0 %v5528_v16  ;;  %v5618_v16 = vld [vmem:[#allocation11 + $0x50] ss:$8 sps:$4 sm:$0xff]  }
 0x2b5   :  { %3081 = vmatprep.subr.bf16.mxu0 %v5533_v17  ;;  %v5623_v17 = vld [vmem:[#allocation11 + $0x64] ss:$8 sps:$4 sm:$0xff]  }
 0x2b8   :  { %3082 = vmatpush1.bf16.msra.mxu0 %v5531_v18  ;;  %v5621_v18 = vld [vmem:[#allocation11 + $0x60] ss:$8 sps:$4 sm:$0xff]  }
 0x2b9   :  { %3083 = vmatprep.subr.bf16.mxu0 %v5536_v19  ;;  %v5626_v19 = vld [vmem:[#allocation11 + $0x74] ss:$8 sps:$4 sm:$0xff]  }
 0x2bc   :  { %3084 = vmatpush1.bf16.msra.mxu0 %v5534_v20  ;;  %v5624_v20 = vld [vmem:[#allocation11 + $0x70] ss:$8 sps:$4 sm:$0xff]  }
 0x2bd   :  { %3085 = vmatprep.subr.bf16.mxu0 %v5539_v21  ;;  %v5629_v21 = vld [vmem:[#allocation11 + $0x84] ss:$8 sps:$4 sm:$0xff]  }
 0x2c0   :  { %3086 = vmatpush1.bf16.msra.mxu0 %v5537_v22  ;;  %v5627_v22 = vld [vmem:[#allocation11 + $0x80] ss:$8 sps:$4 sm:$0xff]  }
 0x2c1   :  { %3087 = vmatprep.subr.bf16.mxu0 %v5542_v23  ;;  %v5632_v23 = vld [vmem:[#allocation11 + $0x94] ss:$8 sps:$4 sm:$0xff]  }
 0x2c4   :  { %3088 = vmatpush1.bf16.msra.mxu0 %v5540_v25  ;;  %v5635_v25 = vld [vmem:[#allocation11 + $0xa4] ss:$8 sps:$4 sm:$0xff]  }
 0x2c5   :  { %3089 = vmatprep.subr.bf16.mxu0 %v5545_v27  ;;  %v5638_v27 = vld [vmem:[#allocation11 + $0xb4] ss:$8 sps:$4 sm:$0xff]  }
 0x2c8   :  { %3090 = vmatpush1.bf16.msra.mxu0 %v5543_v30  ;;  %v5639_v30 = vld [vmem:[#allocation11 + $0xc0] ss:$8 sps:$4 sm:$0xff]  }
 0x2c9   :  { %3091 = vmatprep.subr.bf16.mxu0 %v5548_v31  ;;  %v5644_v31 = vld [vmem:[#allocation11 + $0xd4] ss:$8 sps:$4 sm:$0xff]  }
 0x2cc   :  { %3092 = vmatpush1.bf16.msra.mxu0 %v5546_v32  ;;  %v5642_v32 = vld [vmem:[#allocation11 + $0xd0] ss:$8 sps:$4 sm:$0xff]  }
 0x2cd   :  { %3093 = vmatprep.subr.bf16.mxu0 %v5551_v33  ;;  %v5647_v33 = vld [vmem:[#allocation11 + $0xe4] ss:$8 sps:$4 sm:$0xff]  }
 0x2d0   :  { %3094 = vmatpush1.bf16.msra.mxu0 %v5549_v34  ;;  %v5645_v34 = vld [vmem:[#allocation11 + $0xe0] ss:$8 sps:$4 sm:$0xff]  }
 0x2d1   :  { %3095 = vmatprep.subr.bf16.mxu0 %v5554_v35  ;;  %v5650_v35 = vld [vmem:[#allocation11 + $0xf4] ss:$8 sps:$4 sm:$0xff]  }
 0x2d4   :  { %3096 = vmatpush1.bf16.msra.mxu0 %v5552_v36  ;;  %v5648_v36 = vld [vmem:[#allocation11 + $0xf0] ss:$8 sps:$4 sm:$0xff]  }
 0x2d7   :  { %3098 = vmatmul.mubr.bf16.vlgmr.msra.gmra.mrb[0].mxu0 %v274_v39  ;;  %v3151_v39 = vrot.slane %v3146_v38, %v6461_v47 }
 0x3aa   :  { %v3099_v54 = vpop.f32.mrb[0].mxu0 }
 0x3ab   :  { %v4916_v56 = vadd.f32 %v4915_v52, %v3099_v54  ;;  %v3101_v57 = vpop.f32.mrb[1].mxu0 }
 0x3ac   :  { %v4918_v59 = vadd.f32 %v4917_v53, %v3101_v57  ;;  %v3103_v60 = vpop.f32.mrb[2].mxu0  ;;  %v5651_v57 = vld [vmem:[#allocation14] ss:$8 sps:$4 sm:$0xff]  }
 0x3ad   :  { %v4920_v61 = vadd.f32 %v4919_v55, %v3103_v60  ;;  %v3105_v62 = vpop.f32.mrb[3].mxu0  ;;  %v3108_v0 = vmax.f32 %v4916_v56, 0.0  ;;  %v5659_v60 = vld [vmem:[#allocation14 + $0x24] ss:$8 sps:$4 sm:$0xff]  }
 0x3ae   :  { %v4922_v63 = vadd.f32 %v4921_v58, %v3105_v62  ;;  %v3109_v2 = vmax.f32 %v4918_v59, 0.0  ;;  %v5656_v58 = vld [vmem:[#allocation14 + $0x14] ss:$8 sps:$4 sm:$0xff]   ;;  %v5654_v59 = vld [vmem:[#allocation14 + $0x10] ss:$8 sps:$4 sm:$0xff]  }
 0x3af   :  { %v3110_v1 = vmax.f32 %v4920_v61, 0.0  ;;  %v5657_v61 = vld [vmem:[#allocation14 + $0x20] ss:$8 sps:$4 sm:$0xff]   ;;  %v5662_v62 = vld [vmem:[#allocation14 + $0x34] ss:$8 sps:$4 sm:$0xff]  }
 0x3b0   :  { %v3111_v3 = vmax.f32 %v4922_v63, 0.0  ;;  %v5660_v63 = vld [vmem:[#allocation14 + $0x30] ss:$8 sps:$4 sm:$0xff]  }
 0x3b1   :  { %v3112_v4 = vpack.c.bf16 %v3110_v1, %v3108_v0  ;;  %v5665_v0 = vld [vmem:[#allocation14 + $0x44] ss:$8 sps:$4 sm:$0xff]   ;;  %v5663_v1 = vld [vmem:[#allocation14 + $0x40] ss:$8 sps:$4 sm:$0xff]  }
 0x3b2   :  { %v3113_v5 = vpack.c.bf16 %v3111_v3, %v3109_v2  ;;  %v5668_v2 = vld [vmem:[#allocation14 + $0x54] ss:$8 sps:$4 sm:$0xff]   ;;  %v5666_v3 = vld [vmem:[#allocation14 + $0x50] ss:$8 sps:$4 sm:$0xff]  }
 0x3b4   :  { %3350 = vmatprep.mubr.bf16.mxu1 %v3113_v5  ;;  %v5669_v5 = vld [vmem:[#allocation14 + $0x60] ss:$8 sps:$4 sm:$0xff]  }
 0x3b5   :  { %3351 = vmatmul.mubr.bf16.vlgmr.msra.gmra.mrb[4].mxu1 %v3112_v4  ;;  %v5671_v4 = vld [vmem:[#allocation14 + $0x64] ss:$8 sps:$4 sm:$0xff]  }
 0x3b6   :  { %3573 = vmatpush1.bf16.msra.mxu1 %v5603_v6  ;;  %v5674_v6 = vld [vmem:[#allocation14 + $0x74] ss:$8 sps:$4 sm:$0xff]  }
 0x3b7   :  { %3574 = vmatprep.subr.bf16.mxu1 %v5608_v7  ;;  %v5672_v7 = vld [vmem:[#allocation14 + $0x70] ss:$8 sps:$4 sm:$0xff]  }
 0x3ba   :  { %3575 = vmatpush1.bf16.msra.mxu1 %v5606_v8  ;;  %v5677_v8 = vld [vmem:[#allocation14 + $0x84] ss:$8 sps:$4 sm:$0xff]  }
 0x3bb   :  { %3576 = vmatprep.subr.bf16.mxu1 %v5611_v9  ;;  %v5675_v9 = vld [vmem:[#allocation14 + $0x80] ss:$8 sps:$4 sm:$0xff]  }
 0x3be   :  { %3577 = vmatpush1.bf16.msra.mxu1 %v5609_v10  ;;  %v5680_v10 = vld [vmem:[#allocation14 + $0x94] ss:$8 sps:$4 sm:$0xff]  }
 0x3bf   :  { %3578 = vmatprep.subr.bf16.mxu1 %v5614_v11  ;;  %v5678_v11 = vld [vmem:[#allocation14 + $0x90] ss:$8 sps:$4 sm:$0xff]  }
 0x3c2   :  { %3579 = vmatpush1.bf16.msra.mxu1 %v5612_v12  ;;  %v5683_v12 = vld [vmem:[#allocation14 + $0xa4] ss:$8 sps:$4 sm:$0xff]  }
 0x3c3   :  { %3580 = vmatprep.subr.bf16.mxu1 %v5617_v13  ;;  %v5681_v13 = vld [vmem:[#allocation14 + $0xa0] ss:$8 sps:$4 sm:$0xff]  }
 0x3c6   :  { %3581 = vmatpush1.bf16.msra.mxu1 %v5615_v14  ;;  %v5686_v14 = vld [vmem:[#allocation14 + $0xb4] ss:$8 sps:$4 sm:$0xff]  }
 0x3c7   :  { %3582 = vmatprep.subr.bf16.mxu1 %v5620_v15  ;;  %v5684_v15 = vld [vmem:[#allocation14 + $0xb0] ss:$8 sps:$4 sm:$0xff]  }
 0x3ca   :  { %3583 = vmatpush1.bf16.msra.mxu1 %v5618_v16  ;;  %v5689_v16 = vld [vmem:[#allocation14 + $0xc4] ss:$8 sps:$4 sm:$0xff]  }
 0x3cb   :  { %3584 = vmatprep.subr.bf16.mxu1 %v5623_v17  ;;  %v5687_v17 = vld [vmem:[#allocation14 + $0xc0] ss:$8 sps:$4 sm:$0xff]  }
 0x3ce   :  { %3585 = vmatpush1.bf16.msra.mxu1 %v5621_v18  ;;  %v5692_v18 = vld [vmem:[#allocation14 + $0xd4] ss:$8 sps:$4 sm:$0xff]  }
 0x3cf   :  { %3586 = vmatprep.subr.bf16.mxu1 %v5626_v19  ;;  %v5690_v19 = vld [vmem:[#allocation14 + $0xd0] ss:$8 sps:$4 sm:$0xff]  }
 0x3d2   :  { %3587 = vmatpush1.bf16.msra.mxu1 %v5624_v20  ;;  %v5695_v20 = vld [vmem:[#allocation14 + $0xe4] ss:$8 sps:$4 sm:$0xff]  }
 0x3d3   :  { %3588 = vmatprep.subr.bf16.mxu1 %v5629_v21  ;;  %v5693_v21 = vld [vmem:[#allocation14 + $0xe0] ss:$8 sps:$4 sm:$0xff]  }
 0x3d6   :  { %3589 = vmatpush1.bf16.msra.mxu1 %v5627_v22  ;;  %v5698_v22 = vld [vmem:[#allocation14 + $0xf4] ss:$8 sps:$4 sm:$0xff]  }
 0x3d7   :  { %3590 = vmatprep.subr.bf16.mxu1 %v5632_v23  ;;  %v5696_v23 = vld [vmem:[#allocation14 + $0xf0] ss:$8 sps:$4 sm:$0xff]  }
 0x3da   :  { %3591 = vmatpush1.bf16.msra.mxu1 %v5630_v24  ;;  %v5701_v24 = vld [vmem:[#allocation17 + $0x4] ss:$8 sps:$4 sm:$0xff]  }
 0x3db   :  { %3592 = vmatprep.subr.bf16.mxu1 %v5635_v25  ;;  %v3400_v25 = vld [vmem:[#allocation12] sm:$0x3] }
 0x3de   :  { %3593 = vmatpush1.bf16.msra.mxu1 %v5633_v26  ;;  %v3405_v26 = vrot.slane %v3400_v25, %v6461_v47 }
 0x3df   :  { %3594 = vmatprep.subr.bf16.mxu1 %v5638_v27  ;;  %v3409_v27 = vrot.slane %v3400_v25, %v6463_v49  ;;  %v5747_v25 = vld [vmem:[#allocation20 + $0x40] sm:$0xff]  }
 0x3e2   :  { %3595 = vmatpush1.bf16.msra.mxu1 %v5636_v28 }
 0x3e3   :  { %3596 = vmatprep.subr.bf16.mxu1 %v5641_v29 }
 0x3e6   :  { %3597 = vmatpush1.bf16.msra.mxu1 %v5639_v30 }
 0x3e7   :  { %3598 = vmatprep.subr.bf16.mxu1 %v5644_v31  ;;  %v3625_v31 = vstv %s3624_s25 }
 0x3ea   :  { %3599 = vmatpush1.bf16.msra.mxu1 %v5642_v32  ;;  %v3619_v32 = vstv %s6534_s7 }
 0x3eb   :  { %3600 = vmatprep.subr.bf16.mxu1 %v5647_v33 }
 0x3ee   :  { %3601 = vmatpush1.bf16.msra.mxu1 %v5645_v34 }
 0x3ef   :  { %3602 = vmatprep.subr.bf16.mxu1 %v5650_v35 }
 0x3f2   :  { %3603 = vmatpush1.bf16.msra.mxu1 %v5648_v36 }
 0x3f3   :  { %3840 = vmatprep.subr.bf16.mxu1 %v5653_v37 }
 0x488   :  { %v3352_v41 = vpop.f32.mrb[4].mxu1 }
 0x489   :  { %v6469_v42 = vadd.f32 %v3352_v41, %v3151_v39  ;;  %v3354_v43 = vpop.f32.mrb[5].mxu1 }
 0x48a   :  { %v6471_v44 = vadd.f32 %v3354_v43, %v3155_v40  ;;  %v3356_v45 = vpop.f32.mrb[6].mxu1 }
 0x48b   :  { %v6473_v46 = vadd.f32 %v3356_v45, %v3151_v39  ;;  %v3358_v48 = vpop.f32.mrb[7].mxu1  ;;  %v3361_v51 = vmax.f32 %v6469_v42, 0.0 }
 0x48c   :  { %v6475_v50 = vadd.f32 %v3358_v48, %v3155_v40  ;;  %v3362_v53 = vmax.f32 %v6471_v44, 0.0  ;;  %v5702_v44 = vld [vmem:[#allocation17 + $0x10] ss:$8 sps:$4 sm:$0xff]  }
 0x48d   :  { %v3363_v52 = vmax.f32 %v6473_v46, 0.0  ;;  %v3626_v40 = vmul.f32 %v3625_v31, %v3361_v51  ;;  %v5707_v46 = vld [vmem:[#allocation17 + $0x24] ss:$8 sps:$4 sm:$0xff]  }
 0x48e   :  { %v3364_v54 = vmax.f32 %v6475_v50, 0.0  ;;  %v3627_v45 = vmul.f32 %v3625_v31, %v3362_v53  ;;  %v5708_v50 = vld [vmem:[#allocation17 + $0x30] ss:$8 sps:$4 sm:$0xff]  }
 0x48f   :  { %v3366_v55 = vpack.c.bf16 %v3363_v52, %v3361_v51 }
 0x490   :  { %v3367_v56 = vpack.c.bf16 %v3364_v54, %v3362_v53  ;;  %v5710_v53 = vld [vmem:[#allocation17 + $0x34] ss:$8 sps:$4 sm:$0xff]  }
 0x492   :  { %3604 = vmatprep.mubr.bf16.mxu1 %v3367_v56  ;;  %v3628_v56 = vmul.f32 %v3625_v31, %v3363_v52  ;;  %v5705_v52 = vld [vmem:[#allocation17 + $0x20] ss:$8 sps:$4 sm:$0xff]  }
 0x493   :  { %3605 = vmatmul.mubr.bf16.vlgmr.msra.gmra.mrb[8].mxu1 %v3366_v55 }
 0x494   :  { %3841 = vmatpush1.bf16.msra.mxu1 %v5651_v57 }
 0x495   :  { %3842 = vmatprep.subr.bf16.mxu1 %v5656_v58 }
 0x498   :  { %3843 = vmatpush1.bf16.msra.mxu1 %v5654_v59  ;;  %v3629_v59 = vmul.f32 %v3625_v31, %v3364_v54  ;;  %v5713_v54 = vld [vmem:[#allocation17 + $0x44] ss:$8 sps:$4 sm:$0xff]  }
 0x499   :  { %3844 = vmatprep.subr.bf16.mxu1 %v5659_v60 }
 0x49c   :  { %3845 = vmatpush1.bf16.msra.mxu1 %v5657_v61 }
 0x49d   :  { %3846 = vmatprep.subr.bf16.mxu1 %v5662_v62 }
 0x4a0   :  { %3847 = vmatpush1.bf16.msra.mxu1 %v5660_v63 }
 0x4a1   :  { %3848 = vmatprep.subr.bf16.mxu1 %v5665_v0  ;;  %v5699_v0 = vld [vmem:[#allocation17] ss:$8 sps:$4 sm:$0xff]  }
 0x4a4   :  { %3849 = vmatpush1.bf16.msra.mxu1 %v5663_v1  ;;  %v5704_v1 = vld [vmem:[#allocation17 + $0x14] ss:$8 sps:$4 sm:$0xff]  }
 0x4a5   :  { %3850 = vmatprep.subr.bf16.mxu1 %v5668_v2  ;;  %v5711_v2 = vld [vmem:[#allocation17 + $0x40] ss:$8 sps:$4 sm:$0xff]  }
 0x4a8   :  { %3851 = vmatpush1.bf16.msra.mxu1 %v5666_v3  ;;  %v5716_v3 = vld [vmem:[#allocation17 + $0x54] ss:$8 sps:$4 sm:$0xff]  }
 0x4a9   :  { %3852 = vmatprep.subr.bf16.mxu1 %v5671_v4  ;;  %v5714_v4 = vld [vmem:[#allocation17 + $0x50] ss:$8 sps:$4 sm:$0xff]  }
 0x4ac   :  { %3853 = vmatpush1.bf16.msra.mxu1 %v5669_v5  ;;  %v5719_v5 = vld [vmem:[#allocation17 + $0x64] ss:$8 sps:$4 sm:$0xff]  }
 0x4ad   :  { %3854 = vmatprep.subr.bf16.mxu1 %v5674_v6  ;;  %v5717_v6 = vld [vmem:[#allocation17 + $0x60] ss:$8 sps:$4 sm:$0xff]  }
 0x4b0   :  { %3855 = vmatpush1.bf16.msra.mxu1 %v5672_v7  ;;  %v5722_v7 = vld [vmem:[#allocation17 + $0x74] ss:$8 sps:$4 sm:$0xff]  }
 0x4b1   :  { %3856 = vmatprep.subr.bf16.mxu1 %v5677_v8  ;;  %v5720_v8 = vld [vmem:[#allocation17 + $0x70] ss:$8 sps:$4 sm:$0xff]  }
 0x4b4   :  { %3857 = vmatpush1.bf16.msra.mxu1 %v5675_v9  ;;  %v5725_v9 = vld [vmem:[#allocation17 + $0x84] ss:$8 sps:$4 sm:$0xff]  }
 0x4b5   :  { %3858 = vmatprep.subr.bf16.mxu1 %v5680_v10  ;;  %v5723_v10 = vld [vmem:[#allocation17 + $0x80] ss:$8 sps:$4 sm:$0xff]  }
 0x4b8   :  { %3859 = vmatpush1.bf16.msra.mxu1 %v5678_v11  ;;  %v5728_v11 = vld [vmem:[#allocation17 + $0x94] ss:$8 sps:$4 sm:$0xff]  }
 0x4b9   :  { %3860 = vmatprep.subr.bf16.mxu1 %v5683_v12  ;;  %v5726_v12 = vld [vmem:[#allocation17 + $0x90] ss:$8 sps:$4 sm:$0xff]  }
 0x4bc   :  { %3861 = vmatpush1.bf16.msra.mxu1 %v5681_v13  ;;  %v5731_v13 = vld [vmem:[#allocation17 + $0xa4] ss:$8 sps:$4 sm:$0xff]  }
 0x4bd   :  { %3862 = vmatprep.subr.bf16.mxu1 %v5686_v14  ;;  %v5729_v14 = vld [vmem:[#allocation17 + $0xa0] ss:$8 sps:$4 sm:$0xff]  }
 0x4c0   :  { %3863 = vmatpush1.bf16.msra.mxu1 %v5684_v15  ;;  %v5734_v15 = vld [vmem:[#allocation17 + $0xb4] ss:$8 sps:$4 sm:$0xff]  }
 0x4c1   :  { %3864 = vmatprep.subr.bf16.mxu1 %v5689_v16  ;;  %v5732_v16 = vld [vmem:[#allocation17 + $0xb0] ss:$8 sps:$4 sm:$0xff]  }
 0x4c4   :  { %3865 = vmatpush1.bf16.msra.mxu1 %v5687_v17  ;;  %v5737_v17 = vld [vmem:[#allocation17 + $0xc4] ss:$8 sps:$4 sm:$0xff]  }
 0x4c5   :  { %3866 = vmatprep.subr.bf16.mxu1 %v5692_v18  ;;  %v5735_v18 = vld [vmem:[#allocation17 + $0xc0] ss:$8 sps:$4 sm:$0xff]  }
 0x4c8   :  { %3867 = vmatpush1.bf16.msra.mxu1 %v5690_v19  ;;  %v5740_v19 = vld [vmem:[#allocation17 + $0xd4] ss:$8 sps:$4 sm:$0xff]  }
 0x4c9   :  { %3868 = vmatprep.subr.bf16.mxu1 %v5695_v20  ;;  %v5738_v20 = vld [vmem:[#allocation17 + $0xd0] ss:$8 sps:$4 sm:$0xff]  }
 0x4cc   :  { %3869 = vmatpush1.bf16.msra.mxu1 %v5693_v21  ;;  %v5743_v21 = vld [vmem:[#allocation17 + $0xe4] ss:$8 sps:$4 sm:$0xff]  }
 0x4cd   :  { %3870 = vmatprep.subr.bf16.mxu1 %v5698_v22  ;;  %v5741_v22 = vld [vmem:[#allocation17 + $0xe0] ss:$8 sps:$4 sm:$0xff]  }
 0x4d0   :  { %3871 = vmatpush1.bf16.msra.mxu1 %v5696_v23  ;;  %v5746_v23 = vld [vmem:[#allocation17 + $0xf4] ss:$8 sps:$4 sm:$0xff]  }
 0x4d1   :  { %4094 = vmatprep.subr.bf16.mxu1 %v5701_v24  ;;  %v5744_v24 = vld [vmem:[#allocation17 + $0xf0] ss:$8 sps:$4 sm:$0xff]  }
 0x566   :  { %v3606_v28 = vpop.f32.mrb[8].mxu1 }
 0x567   :  { %v3607_v29 = vadd.f32 %v3606_v28, %v3405_v26  ;;  %v3608_v30 = vpop.f32.mrb[9].mxu1 }
 0x568   :  { %v3609_v33 = vadd.f32 %v3608_v30, %v3409_v27  ;;  %v3610_v34 = vpop.f32.mrb[10].mxu1 }
 0x569   :  { %v3615_v35 = vmax.f32 %v3607_v29, 0.0  ;;  %v3611_v36 = vadd.f32 %v3610_v34, %v3405_v26  ;;  %v3612_v37 = vpop.f32.mrb[11].mxu1  ;;  %v3668_v26 = vld [vmem:[#allocation15] sm:$0x3] }
 0x56a   :  { %v3616_v38 = vmax.f32 %v3609_v33, 0.0  ;;  %v3613_v39 = vadd.f32 %v3612_v37, %v3409_v27  ;;  %v3673_v27 = vrot.slane %v3668_v26, %v6461_v47  ;;  %v3677_v28 = vrot.slane %v3668_v26, %v6463_v49 }
 0x56b   :  { %v3620_v41 = vmul.f32 %v3619_v32, %v3615_v35  ;;  %v3617_v43 = vmax.f32 %v3611_v36, 0.0 }
 0x56c   :  { %v3621_v48 = vmul.f32 %v3619_v32, %v3616_v38  ;;  %v3618_v55 = vmax.f32 %v3613_v39, 0.0 }
 0x56d   :  { %v3630_v57 = vadd.f32 %v3626_v40, %v3620_v41  ;;  %v3622_v58 = vmul.f32 %v3619_v32, %v3617_v43 }
 0x56e   :  { %v3631_v60 = vadd.f32 %v3627_v45, %v3621_v48  ;;  %v3623_v61 = vmul.f32 %v3619_v32, %v3618_v55  ;;  %v5748_v45 = vld [vmem:[#allocation20] sm:$0xff]   ;;  %v5749_v48 = vld [vmem:[#allocation20 + $0x48] sm:$0xff]  }
 0x56f   :  { %v3632_v62 = vadd.f32 %v3628_v56, %v3622_v58  ;;  %v5750_v55 = vld [vmem:[#allocation20 + $0x8] sm:$0xff]   ;;  %v5751_v56 = vld [vmem:[#allocation20 + $0x50] sm:$0xff]   ;;  %v5753_v58 = vld [vmem:[#allocation20 + $0x58] sm:$0xff]  }
 0x570   :  { %v3633_v42 = vadd.f32 %v3629_v59, %v3623_v61  ;;  %v5754_v59 = vld [vmem:[#allocation20 + $0x18] sm:$0xff]   ;;  %v5756_v61 = vld [vmem:[#allocation20 + $0x20] sm:$0xff]  }
 0x571   :  { %v3634_v51 = vpack.c.bf16 %v3632_v62, %v3630_v57  ;;  %v5752_v57 = vld [vmem:[#allocation20 + $0x10] sm:$0xff]   ;;  %v5757_v62 = vld [vmem:[#allocation20 + $0x68] sm:$0xff]  }
 0x572   :  { %v3635_v63 = vpack.c.bf16 %v3633_v42, %v3631_v60  ;;  %v5755_v60 = vld [vmem:[#allocation20 + $0x60] sm:$0xff]   ;;  %v5758_v42 = vld [vmem:[#allocation20 + $0x28] sm:$0xff]  }
 0x574   :  { %3872 = vmatprep.mubr.bf16.mxu1 %v3635_v63  ;;  %v5760_v63 = vld [vmem:[#allocation20 + $0x30] sm:$0xff]  }
 0x575   :  { %3873 = vmatmul.mubr.bf16.vlgmr.msra.gmra.mrb[12].mxu1 %v3634_v51  ;;  %v5759_v51 = vld [vmem:[#allocation20 + $0x70] sm:$0xff]  }
 0x576   :  { %4095 = vmatpush1.bf16.msra.mxu1 %v5699_v0  ;;  %v5761_v0 = vld [vmem:[#allocation20 + $0x78] sm:$0xff]  }
 0x577   :  { %4096 = vmatprep.subr.bf16.mxu1 %v5704_v1  ;;  %v5762_v1 = vld [vmem:[#allocation20 + $0x38] sm:$0xff]  }
 0x57a   :  { %4097 = vmatpush1.bf16.msra.mxu1 %v5702_v44  ;;  %v3922_v44 = vld [vmem:[#allocation18] sm:$0x3] }
 0x57b   :  { %4098 = vmatprep.subr.bf16.mxu1 %v5707_v46  ;;  %v3927_v46 = vrot.slane %v3922_v44, %v6461_v47 }
 0x57e   :  { %4099 = vmatpush1.bf16.msra.mxu1 %v5705_v52  ;;  %v3931_v52 = vrot.slane %v3922_v44, %v6463_v49 }
 0x57f   :  { %4100 = vmatprep.subr.bf16.mxu1 %v5710_v53 }
 0x582   :  { %4101 = vmatpush1.bf16.msra.mxu1 %v5708_v50 }
 0x583   :  { %4102 = vmatprep.subr.bf16.mxu1 %v5713_v54 }
 0x586   :  { %4103 = vmatpush1.bf16.msra.mxu1 %v5711_v2  ;;  %v4147_v2 = vstv %s4146_s3 }
 0x587   :  { %4104 = vmatprep.subr.bf16.mxu1 %v5716_v3  ;;  %v4141_v3 = vstv %s6539_s12 }
 0x58a   :  { %4105 = vmatpush1.bf16.msra.mxu1 %v5714_v4 }
 0x58b   :  { %4106 = vmatprep.subr.bf16.mxu1 %v5719_v5 }
 0x58e   :  { %4107 = vmatpush1.bf16.msra.mxu1 %v5717_v6 }
 0x58f   :  { %4108 = vmatprep.subr.bf16.mxu1 %v5722_v7 }
 0x592   :  { %4109 = vmatpush1.bf16.msra.mxu1 %v5720_v8 }
 0x593   :  { %4110 = vmatprep.subr.bf16.mxu1 %v5725_v9 }
 0x596   :  { %4111 = vmatpush1.bf16.msra.mxu1 %v5723_v10 }
 0x597   :  { %4112 = vmatprep.subr.bf16.mxu1 %v5728_v11 }
 0x59a   :  { %4113 = vmatpush1.bf16.msra.mxu1 %v5726_v12 }
 0x59b   :  { %4114 = vmatprep.subr.bf16.mxu1 %v5731_v13 }
 0x59e   :  { %4115 = vmatpush1.bf16.msra.mxu1 %v5729_v14 }
 0x59f   :  { %4116 = vmatprep.subr.bf16.mxu1 %v5734_v15 }
 0x5a2   :  { %4117 = vmatpush1.bf16.msra.mxu1 %v5732_v16 }
 0x5a3   :  { %4118 = vmatprep.subr.bf16.mxu1 %v5737_v17 }
 0x5a6   :  { %4119 = vmatpush1.bf16.msra.mxu1 %v5735_v18 }
 0x5a7   :  { %4120 = vmatprep.subr.bf16.mxu1 %v5740_v19 }
 0x5aa   :  { %4121 = vmatpush1.bf16.msra.mxu1 %v5738_v20 }
 0x5ab   :  { %4122 = vmatprep.subr.bf16.mxu1 %v5743_v21 }
 0x5ae   :  { %4123 = vmatpush1.bf16.msra.mxu1 %v5741_v22 }
 0x5af   :  { %4124 = vmatprep.subr.bf16.mxu1 %v5746_v23 }
 0x5b2   :  { %4125 = vmatpush1.bf16.msra.mxu1 %v5744_v24 }
 0x5b3   :  { %4893 = vmatprep.subr.bf16.mxu1 %v5747_v25 }
 0x648   :  { %v3874_v29 = vpop.f32.mrb[12].mxu1 }
 0x649   :  { %v3875_v30 = vadd.f32 %v3874_v29, %v3673_v27  ;;  %v3876_v31 = vpop.f32.mrb[13].mxu1  ;;  %v4867_v29 = vld [vmem:[#allocation21] ss:$0 sm:$0xff] }
 0x64a   :  { %v6507_v32 = vadd.f32 %v3876_v31, %v3677_v28  ;;  %v3878_v33 = vpop.f32.mrb[14].mxu1 }
 0x64b   :  { %v6509_v34 = vadd.f32 %v3878_v33, %v3673_v27  ;;  %v3880_v35 = vpop.f32.mrb[15].mxu1  ;;  %v3883_v37 = vmax.f32 %v3875_v30, 0.0 }
 0x64c   :  { %v6511_v36 = vadd.f32 %v3880_v35, %v3677_v28  ;;  %v3884_v39 = vmax.f32 %v6507_v32, 0.0 }
 0x64d   :  { %v3885_v38 = vmax.f32 %v6509_v34, 0.0  ;;  %v4148_v10 = vmul.f32 %v4147_v2, %v3883_v37 }
 0x64e   :  { %v3886_v40 = vmax.f32 %v6511_v36, 0.0  ;;  %v4149_v13 = vmul.f32 %v4147_v2, %v3884_v39 }
 0x64f   :  { %v3888_v41 = vpack.c.bf16 %v3885_v38, %v3883_v37  ;;  %v4150_v15 = vmul.f32 %v4147_v2, %v3885_v38 }
 0x650   :  { %v3889_v43 = vpack.c.bf16 %v3886_v40, %v3884_v39  ;;  %v4151_v18 = vmul.f32 %v4147_v2, %v3886_v40 }
 0x652   :  { %4126 = vmatprep.mubr.bf16.mxu1 %v3889_v43 }
 0x653   :  { %4127 = vmatmul.mubr.bf16.vlgmr.msra.gmra.mrb[16].mxu1 %v3888_v41 }
 0x654   :  { %4894 = vmatpush3.bf16.msra.mxu1 %v5748_v45 }
 0x655   :  { %4895 = vmatprep.subr.bf16.mxu1 %v5749_v48 }
 0x658   :  { %4896 = vmatpush3.bf16.msra.mxu1 %v5750_v55 }
 0x659   :  { %4897 = vmatprep.subr.bf16.mxu1 %v5751_v56 }
 0x65c   :  { %4898 = vmatpush3.bf16.msra.mxu1 %v5752_v57 }
 0x65d   :  { %4899 = vmatprep.subr.bf16.mxu1 %v5753_v58 }
 0x660   :  { %4900 = vmatpush3.bf16.msra.mxu1 %v5754_v59 }
 0x661   :  { %4901 = vmatprep.subr.bf16.mxu1 %v5755_v60 }
 0x664   :  { %4902 = vmatpush3.bf16.msra.mxu1 %v5756_v61 }
 0x665   :  { %4903 = vmatprep.subr.bf16.mxu1 %v5757_v62 }
 0x668   :  { %4904 = vmatpush3.bf16.msra.mxu1 %v5758_v42 }
 0x669   :  { %4905 = vmatprep.subr.bf16.mxu1 %v5759_v51 }
 0x66c   :  { %4906 = vmatpush3.bf16.msra.mxu1 %v5760_v63 }
 0x66d   :  { %4907 = vmatprep.subr.bf16.mxu1 %v5761_v0 }
 0x670   :  { %4908 = vmatpush3.bf16.msra.mxu1 %v5762_v1 }
 0x726   :  { %v4128_v53 = vpop.f32.mrb[16].mxu1 }
 0x727   :  { %v4129_v50 = vadd.f32 %v4128_v53, %v3927_v46  ;;  %v4130_v54 = vpop.f32.mrb[17].mxu1 }
 0x728   :  { %v4131_v4 = vadd.f32 %v4130_v54, %v3931_v52  ;;  %v4132_v5 = vpop.f32.mrb[18].mxu1 }
 0x729   :  { %v4137_v6 = vmax.f32 %v4129_v50, 0.0  ;;  %v4133_v7 = vadd.f32 %v4132_v5, %v3927_v46  ;;  %v4134_v8 = vpop.f32.mrb[19].mxu1 }
 0x72a   :  { %v4138_v47 = vmax.f32 %v4131_v4, 0.0  ;;  %v4135_v9 = vadd.f32 %v4134_v8, %v3931_v52 }
 0x72b   :  { %v4142_v11 = vmul.f32 %v4141_v3, %v4137_v6  ;;  %v4139_v12 = vmax.f32 %v4133_v7, 0.0 }
 0x72c   :  { %v4143_v49 = vmul.f32 %v4141_v3, %v4138_v47  ;;  %v4140_v14 = vmax.f32 %v4135_v9, 0.0 }
 0x72d   :  { %v4152_v16 = vadd.f32 %v4148_v10, %v4142_v11  ;;  %v4144_v17 = vmul.f32 %v4141_v3, %v4139_v12 }
 0x72e   :  { %v4153_v19 = vadd.f32 %v4149_v13, %v4143_v49  ;;  %v4145_v20 = vmul.f32 %v4141_v3, %v4140_v14 }
 0x72f   :  { %v4154_v21 = vadd.f32 %v4150_v15, %v4144_v17 }
 0x730   :  { %v4155_v22 = vadd.f32 %v4151_v18, %v4145_v20 }
 0x731   :  { %v4156_v23 = vpack.c.bf16 %v4154_v21, %v4152_v16 }
 0x732   :  { %v4157_v24 = vpack.c.bf16 %v4155_v22, %v4153_v19 }
 0x734   :  { %4325 = vmatprep.mubr.bf16.mxu1 %v4157_v24 }
 0x735   :  { %4326 = vmatmul.mubr.bf16.vlgmr.msra.gmra.mrb[20].mxu1 %v4156_v23 }
 0x808   :  { %v4909_v25 = vpop.f32.mrb[20].mxu1 }
 0x809   :  { %v4910_v26 = vpop.f32.mrb[21].mxu1 }
 0x80a   :  { %v4911_v27 = vadd.f32 %v4910_v26, %v4909_v25  ;;  %v4912_v28 = vpop.f32.mrb[22].mxu1 }
 0x80b   :  { %v4913_v30 = vpop.f32.mrb[23].mxu1 }
 0x80c   :  { %v4914_v31 = vadd.f32 %v4913_v30, %v4912_v28  ;;  %v4328_v32 = vadd.f32 %v4911_v27, %v4867_v29 }
 0x80e   :  { %v4331_v33 = vadd.f32 %v4914_v31, %v4867_v29 }
 0x810   :  { %v4891_v34 = vpack.c.bf16 %v4331_v33, %v4328_v32 }
 0x812   :  { %4892 = vst [vmem:[%s6542_s15] sm:$0xff] %v4891_v34  }
 0x813   :  { %4348 = vsyncpa [#allocation5], 1 }
 0x814   :  { %4349 = vsyncpa [#allocation7], 1 }
 0x815   :  { %4350 = vsyncpa [#allocation10], 1 }
 0x816   :  { %4351 = vsyncpa [#allocation13], 1 }
 0x817   :  { %4352 = vsyncpa [#allocation16], 1 }
 0x818   :  { %4353 = vsyncpa [#allocation19], 1 }
 0x819   :  { %4354 = vsyncpa [#allocation22], 1 }

</bundles_post_ra>
